<compile_context>
chip_gen: v5e
topology: v5e:2x2
jax: 0.10.0
libtpu: 0.0.40
codegen_flags: <defaults>
</compile_context>

<pallas_src>
import functools
import math

import jax
import jax.numpy as jnp
from jax import lax
from jax.experimental import pallas as pl
from jax.experimental.pallas import tpu as pltpu


def _cdiv(a, b):
    return (a + b - 1) // b


def _round_up(a, b):
    return _cdiv(a, b) * b


# ----------------------------------------------------------------------------
# small numerics helpers (match torch helpers in the reference module)
# ----------------------------------------------------------------------------
def _nan_to_num(x, val=0.0):
    return jnp.where(jnp.isfinite(x), x, jnp.full_like(x, val))


def _norm(x, axis, eps=1e-8, keepdims=False):
    return jnp.sqrt(jnp.sum(x * x, axis=axis, keepdims=keepdims) + eps)


def _normalize(x, axis=-1):
    return _nan_to_num(x / _norm(x, axis=axis, keepdims=True))


def _rbf(values, v_min, v_max, n_bins=16):
    centers = jnp.linspace(v_min, v_max, n_bins, dtype=jnp.float32)
    std = (v_max - v_min) / n_bins
    z = (values[..., None] - centers) / std
    return jnp.exp(-z * z)


# ----------------------------------------------------------------------------
# Pallas kernel: GVP (activations=(None,None)) -> tuple LayerNorm
#                (+ optional confidence Linear added to the scalar channel)
#
# Feature-major: every ref is [features, tile] with the row index on the lane
# axis.  Vector features are flattened as row (channel*3 + xyz); contractions
# over vector channels use kron(W, I3); per-vector squared norms use a 0/1
# "segment sum" matrix; its transpose broadcasts the per-vector mask back to
# xyz.  Everything lowers to dense 2-D MXU matmuls with lane-width = tile.
# ----------------------------------------------------------------------------
def _make_gvp_ln_kernel(has_conf, gvp_eps, ln_eps, scalar_ln_eps):
    def kernel(*refs):
        if has_conf:
            (x_ref, whf_ref, sh_ref, wsf_ref, wsv_ref, wsb_ref, wvk_ref,
             svo_ref, evo_ref, rso_ref, rvo_ref, g_ref, b_ref, wcf_ref,
             s_out_ref, v_out_ref) = refs
        else:
            (x_ref, whf_ref, sh_ref, wsf_ref, wsv_ref, wsb_ref, wvk_ref,
             svo_ref, evo_ref, rso_ref, rvo_ref, g_ref, b_ref,
             s_out_ref, v_out_ref) = refs

        f32 = jnp.float32
        x = x_ref[...].astype(f32)                                        # [F, T]

        # ---- GVP (scalar_act = vector_act = None); contractions on the MXU ----
        vh = jnp.dot(whf_ref[...], x, preferred_element_type=f32)         # [h*3, T]
        vn2 = jnp.dot(sh_ref[...], vh * vh, preferred_element_type=f32)   # [h, T]
        vn = jnp.sqrt(jnp.maximum(vn2, gvp_eps))                          # [h, T]
        s_o = (jnp.dot(wsf_ref[...], x, preferred_element_type=f32)
               + jnp.dot(wsv_ref[...], vn, preferred_element_type=f32)
               + wsb_ref[...])                                            # [so, T]
        v_o = jnp.dot(wvk_ref[...], vh, preferred_element_type=f32)       # [vo*3, T]

        # ---- tuple LayerNorm, vector part (eps = 1e-4, nonzero mask) ----
        von2 = jnp.maximum(
            jnp.dot(svo_ref[...], v_o * v_o, preferred_element_type=f32),
            ln_eps)                                                       # [vo, T]
        nz = (von2 > 2.0 * ln_eps).astype(f32)                            # [vo, T]
        num = jnp.dot(rvo_ref[...], von2 * nz, preferred_element_type=f32)  # [1, T]
        den = jnp.dot(rvo_ref[...], nz, preferred_element_type=f32)         # [1, T]
        inv_vstd = lax.rsqrt(num / (ln_eps + den) + ln_eps)               # [1, T]
        factor = nz * inv_vstd                                            # [vo, T]
        v_final = jnp.dot(evo_ref[...], factor,
                          preferred_element_type=f32) * v_o               # [vo*3, T]

        # ---- scalar nn.LayerNorm (eps = 1e-5, affine); mean/var via MXU ----
        mu = jnp.dot(rso_ref[...], s_o, preferred_element_type=f32)       # [1, T]
        d = s_o - mu
        var = jnp.dot(rso_ref[...], d * d, preferred_element_type=f32)    # [1, T]
        s_ln = d * lax.rsqrt(var + scalar_ln_eps) * g_ref[...] + b_ref[...]

        if has_conf:
            # confidence Linear: weight zero-padded to consume the full slab;
            # its bias is already folded into b_ref by the wrapper.
            s_ln = s_ln + jnp.dot(wcf_ref[...], x, preferred_element_type=f32)

        s_out_ref[...] = s_ln.astype(s_out_ref.dtype)
        v_out_ref[...] = v_final.astype(v_out_ref.dtype)

    return kernel


def gvp_layernorm_embed(s, v, p, conf_rbf=None, tile=8192,
                        io_dtype=jnp.bfloat16, out_dtype=jnp.float32,
                        gvp_eps=1e-8, ln_eps=1e-4, scalar_ln_eps=1e-5):
    """s: [N, si], v: [N, vi, 3]; returns (s_out [N, so], v_out [N, vo, 3]).

    io_dtype controls the streamed dtype (bf16 halves HBM traffic on this
    memory-bound kernel; accumulation and LayerNorm math stay f32 inside).
    """
    N, si = s.shape
    vi = v.shape[1]
    wh = p['wh'].astype(jnp.float32)                 # [h, vi]   PyTorch layout
    h = wh.shape[0]
    ws_w = p['ws_w'].astype(jnp.float32)             # [so, si+h] (s cols first)
    so = ws_w.shape[0]
    wv = p['wv'].astype(jnp.float32)                 # [vo, h]
    vo = wv.shape[0]
    has_conf = conf_rbf is not None
    nc = conf_rbf.shape[1] if has_conf else 0
    feat = si + vi * 3 + nc

    # ---- weights, feature-major [out, in], built once in the wrapper ----
    eye3 = jnp.eye(3, dtype=jnp.float32)
    wh_full = jnp.zeros((h * 3, feat), jnp.float32).at[:, si:si + vi * 3].set(
        jnp.kron(wh, eye3))                                           # [h*3, F]
    s_h = jnp.kron(jnp.eye(h, dtype=jnp.float32),
                   jnp.ones((1, 3), jnp.float32))                     # [h, h*3]
    ws_full = jnp.zeros((so, feat), jnp.float32).at[:, :si].set(ws_w[:, :si])
    ws_v = ws_w[:, si:]                                               # [so, h]
    wsb = p['ws_b'].reshape(so, 1).astype(jnp.float32)
    wvk = jnp.kron(wv, eye3)                                          # [vo*3, h*3]
    s_vo = jnp.kron(jnp.eye(vo, dtype=jnp.float32),
                    jnp.ones((1, 3), jnp.float32))                    # [vo, vo*3]
    e_vo = s_vo.T                                                     # [vo*3, vo]
    r_so = jnp.full((1, so), 1.0 / so, jnp.float32)                   # mean row
    r_vo = jnp.ones((1, vo), jnp.float32)                             # sum row
    g = p['ln_g'].reshape(so, 1).astype(jnp.float32)
    b_eff = p['ln_b'].astype(jnp.float32)
    if has_conf:
        b_eff = b_eff + p['conf_b'].astype(jnp.float32)               # fold conf bias
    b_eff = b_eff.reshape(so, 1)

    weights = [wh_full, s_h, ws_full, ws_v, wsb, wvk, s_vo, e_vo, r_so, r_vo,
               g, b_eff]
    if has_conf:
        weights.append(jnp.zeros((so, feat), jnp.float32)
                       .at[:, si + vi * 3:].set(p['conf_w'].astype(jnp.float32)))

    # ---- fused feature-major input slab [F, N]: rows = [s | v(xyz) | conf] ----
    parts = [s.T, v.reshape(N, vi * 3).T]
    if has_conf:
        parts.append(conf_rbf.T)
    x_fm = jnp.concatenate(parts, axis=0).astype(io_dtype)            # [F, N]

    # ---- lane tiling: multiple of 128; keep >=2 grid steps when N allows so
    #      both v7x TensorCores get rows (single "parallel" grid axis). ----
    tile_max = max(128, (int(tile) // 128) * 128)
    tile = min(tile_max, max(128, _round_up(_cdiv(N, 2), 128)))
    n_pad = _round_up(N, tile)
    x_p = jnp.pad(x_fm, ((0, 0), (0, n_pad - N)))

    data_spec = pl.BlockSpec((feat, tile), lambda i: (0, i))
    # constant index_maps: weights stay VMEM-resident across grid steps
    weight_specs = [pl.BlockSpec(w.shape, lambda i: (0, 0)) for w in weights]
    kernel = _make_gvp_ln_kernel(has_conf, gvp_eps, ln_eps, scalar_ln_eps)

    s_out, v_out = pl.pallas_call(
        kernel,
        out_shape=(jax.ShapeDtypeStruct((so, n_pad), io_dtype),
                   jax.ShapeDtypeStruct((vo * 3, n_pad), io_dtype)),
        grid_spec=pltpu.PrefetchScalarGridSpec(
            num_scalar_prefetch=0,
            grid=(n_pad // tile,),
            in_specs=[data_spec] + weight_specs,
            out_specs=[pl.BlockSpec((so, tile), lambda i: (0, i)),
                       pl.BlockSpec((vo * 3, tile), lambda i: (0, i))]),
        compiler_params=pltpu.CompilerParams(
            dimension_semantics=("parallel",),       # shard rows over v7x's 2 TCs
            vmem_limit_bytes=48 * 1024 * 1024),      # v5e default is only 16 MiB
    )(x_p, *weights)

    s_out = s_out[:, :N].T.astype(out_dtype)
    v_out = v_out[:, :N].T.reshape(N, vo, 3).astype(out_dtype)
    return s_out, v_out


# ----------------------------------------------------------------------------
# GVPInputFeaturizer (plain-JAX glue: dihedrals, orientations, knn, gathers)
# ----------------------------------------------------------------------------
def _dihedrals(X, eps=1e-7):
    B = X.shape[0]
    Xf = X[:, :, :3].reshape(B, -1, 3)           # [B, 3L, 3]
    dX = Xf[:, 1:] - Xf[:, :-1]
    U = _normalize(dX, axis=-1)
    u_2, u_1, u_0 = U[:, :-2], U[:, 1:-1], U[:, 2:]
    n_2 = _normalize(jnp.cross(u_2, u_1), axis=-1)
    n_1 = _normalize(jnp.cross(u_1, u_0), axis=-1)
    cosD = jnp.clip(jnp.sum(n_2 * n_1, -1), -1 + eps, 1 - eps)
    D = jnp.sign(jnp.sum(u_2 * n_1, -1)) * jnp.arccos(cosD)
    D = jnp.pad(D, ((0, 0), (1, 2)))
    D = D.reshape(B, -1, 3)
    return jnp.concatenate([jnp.cos(D), jnp.sin(D)], -1)


def _orientations(Xca):
    fwd = _normalize(Xca[:, 1:] - Xca[:, :-1])
    bwd = _normalize(Xca[:, :-1] - Xca[:, 1:])
    fwd = jnp.pad(fwd, ((0, 0), (0, 1), (0, 0)))
    bwd = jnp.pad(bwd, ((0, 0), (1, 0), (0, 0)))
    return jnp.concatenate([fwd[..., None, :], bwd[..., None, :]], axis=-2)


def _sidechains(X):
    n, origin, c = X[:, :, 0], X[:, :, 1], X[:, :, 2]
    c, n = _normalize(c - origin), _normalize(n - origin)
    bisector = _normalize(c + n)
    perp = _normalize(jnp.cross(c, n))
    return -bisector * math.sqrt(1.0 / 3) - perp * math.sqrt(2.0 / 3)


def get_node_features(coords, coord_mask):
    d = _dihedrals(coords)                                          # [B,L,6]
    node_s = jnp.concatenate(
        [d, coord_mask.astype(jnp.float32)[..., None]], -1)         # [B,L,7]
    X_ca = coords[:, :, 1]
    node_v = jnp.concatenate(
        [_orientations(X_ca), _sidechains(coords)[:, :, None, :]], axis=-2)  # [B,L,3,3]
    return node_s, node_v


def get_edge_features(coords, coord_mask, padding_mask, top_k,
                      num_positional_embeddings=16):
    B, L = coords.shape[0], coords.shape[1]
    X_ca = coords[:, :, 1]

    cm2 = coord_mask[:, None, :] & coord_mask[:, :, None]
    rm = ~padding_mask
    rm2 = rm[:, None, :] & rm[:, :, None]
    dX = X_ca[:, None, :, :] - X_ca[:, :, None, :]
    D = cm2.astype(jnp.float32) * _norm(dX, axis=-1)
    seqpos = jnp.arange(L)
    Dseq = jnp.abs(seqpos[:, None] - seqpos[None, :])[None].astype(jnp.float32)
    D_adjust = (_nan_to_num(D)
                + (~cm2).astype(jnp.float32) * (1e8 + Dseq * 1e6)
                + (~rm2).astype(jnp.float32) * 1e10)

    k = min(top_k, L)
    # smallest-k neighbors via lax.top_k (O(L^2 k) instead of a full argsort)
    neg_vals, E_idx = lax.top_k(-D_adjust, k)
    D_neighbors = -neg_vals
    E_coord_mask = (D_neighbors < 5e7).reshape(B, L * k)[..., None]
    E_residue_mask = (D_neighbors < 5e9).reshape(B, L * k)

    src = jnp.broadcast_to(jnp.arange(L)[None, :, None], (B, L, k))
    edge_index = jnp.stack([src, E_idx], axis=0).reshape(2, B, L * k)
    E_dist = D_neighbors.reshape(B, L * k)

    d = (edge_index[0] - edge_index[1]).astype(jnp.float32)
    freq = jnp.exp(jnp.arange(0, num_positional_embeddings, 2, dtype=jnp.float32)
                   * -(math.log(10000.0) / num_positional_embeddings))
    angles = d[..., None] * freq
    pos_emb = jnp.concatenate([jnp.cos(angles), jnp.sin(angles)], -1)

    D_rbf = _rbf(E_dist, 0.0, 20.0)
    X_src = jnp.broadcast_to(X_ca[:, :, None, :], (B, L, k, 3)).reshape(B, L * k, 3)
    dest_idx = edge_index[1]
    X_dest = jnp.take_along_axis(
        X_ca, jnp.broadcast_to(dest_idx[:, :, None], (B, L * k, 3)), axis=1)
    coord_mask_src = jnp.broadcast_to(coord_mask[:, :, None], (B, L, k)).reshape(B, L * k)
    coord_mask_dest = jnp.take_along_axis(coord_mask, dest_idx, axis=1)

    E_vectors = X_src - X_dest
    ecm = E_coord_mask.astype(jnp.float32)
    E_vector_mean = (jnp.sum(E_vectors * ecm, axis=1, keepdims=True)
                     / jnp.sum(ecm, axis=1, keepdims=True))
    E_vectors = E_vectors * ecm + E_vector_mean * (1.0 - ecm)

    edge_s = jnp.concatenate([D_rbf, pos_emb], axis=-1)
    edge_v = _normalize(E_vectors)[:, :, None, :]
    edge_s, edge_v = _nan_to_num(edge_s), _nan_to_num(edge_v)
    edge_s = jnp.concatenate(
        [edge_s,
         (~coord_mask_src).astype(jnp.float32)[..., None],
         (~coord_mask_dest).astype(jnp.float32)[..., None]], axis=-1)   # [B,Lk,34]

    bad = (~E_residue_mask) | (~E_coord_mask[..., 0])    # remove_edges_without_coords=True
    edge_index = jnp.where(bad[None], -1, edge_index)
    return (edge_s, edge_v), jnp.transpose(edge_index, (1, 0, 2))       # [B,2,Lk]


def flatten_graph(node_embeddings, edge_embeddings, edge_index):
    x_s, x_v = node_embeddings
    e_s, e_v = edge_embeddings
    B, N = x_s.shape[0], x_s.shape[1]
    E = e_s.shape[1]
    node_embeddings = (x_s.reshape(B * N, -1), x_v.reshape(B * N, x_v.shape[2], 3))
    edge_embeddings = (e_s.reshape(B * E, -1), e_v.reshape(B * E, e_v.shape[2], 3))
    edge_mask = jnp.any(edge_index != -1, axis=1)                       # [B, E]
    edge_index = edge_index + (jnp.arange(B) * N)[:, None, None]
    edge_index = jnp.transpose(edge_index, (1, 0, 2)).reshape(2, B * E)
    edge_mask = edge_mask.reshape(-1)
    # TODO(synk): torch compacts with edge_index[:, edge_mask] (dynamic shape); JAX has
    # no static-shape equivalent, so we return full-size arrays (-1 marks removed edges)
    # plus the boolean edge_mask.
    edge_index = jnp.where(edge_mask[None], edge_index, -1)
    return node_embeddings, edge_embeddings, edge_index, edge_mask


# ----------------------------------------------------------------------------
# Full module forward
# ----------------------------------------------------------------------------
def gvp_graph_embedding_forward(params, coords, coord_mask, padding_mask,
                                confidence, top_k):
    node_s, node_v = get_node_features(coords, coord_mask)
    (edge_s, edge_v), edge_index = get_edge_features(coords, coord_mask,
                                                     padding_mask, top_k)
    B, L = node_s.shape[0], node_s.shape[1]
    E = edge_s.shape[1]

    conf_rbf = _rbf(confidence, 0.0, 1.0).reshape(B * L, 16)
    ns_emb, nv_emb = gvp_layernorm_embed(
        node_s.reshape(B * L, -1), node_v.reshape(B * L, node_v.shape[2], 3),
        params['node'], conf_rbf=conf_rbf, io_dtype=jnp.bfloat16)
    es_emb, ev_emb = gvp_layernorm_embed(
        edge_s.reshape(B * E, -1), edge_v.reshape(B * E, edge_v.shape[2], 3),
        params['edge'], io_dtype=jnp.bfloat16)

    node_emb = (ns_emb.reshape(B, L, -1), nv_emb.reshape(B, L, -1, 3))
    edge_emb = (es_emb.reshape(B, E, -1), ev_emb.reshape(B, E, -1, 3))
    return flatten_graph(node_emb, edge_emb, edge_index)


def init_params(key, node_dims=(32, 8), edge_dims=(32, 4)):
    ks = jax.random.split(key, 10)

    def lin(k, out_d, in_d, scale=0.1):
        return jax.random.normal(k, (out_d, in_d), jnp.float32) * scale

    ns, nv = node_dims
    es, ev = edge_dims
    n_h = max(3, nv)   # GVP h_dim = max(vi, vo), node vi=3
    e_h = max(1, ev)   # edge vi=1
    node = dict(
        wh=lin(ks[0], n_h, 3),
        ws_w=lin(ks[1], ns, n_h + 7),
        ws_b=jax.random.normal(ks[2], (ns,), jnp.float32) * 0.1,
        wv=lin(ks[3], nv, n_h),
        ln_g=jnp.ones((ns,), jnp.float32),
        ln_b=jnp.zeros((ns,), jnp.float32),
        conf_w=lin(ks[4], ns, 16),
        conf_b=jax.random.normal(ks[5], (ns,), jnp.float32) * 0.1,
    )
    edge = dict(
        wh=lin(ks[6], e_h, 1),
        ws_w=lin(ks[7], es, e_h + 34),
        ws_b=jax.random.normal(ks[8], (es,), jnp.float32) * 0.1,
        wv=lin(ks[9], ev, e_h),
        ln_g=jnp.ones((es,), jnp.float32),
        ln_b=jnp.zeros((es,), jnp.float32),
    )
    return dict(node=node, edge=edge)


if __name__ == "__main__":
    key = jax.random.PRNGKey(0)
    k1, k2, k3 = jax.random.split(key, 3)

    B, L, top_k = 2, 8, 4
    coords = jax.random.normal(k1, (B, L, 3, 3), jnp.float32) * 3.0   # N, CA, C backbone
    coord_mask = jnp.ones((B, L), jnp.bool_).at[0, 5].set(False)
    padding_mask = jnp.zeros((B, L), jnp.bool_).at[1, 7].set(True)
    confidence = jax.random.uniform(k2, (B, L), jnp.float32)

    params = init_params(k3, node_dims=(32, 8), edge_dims=(32, 4))

    fwd = jax.jit(functools.partial(gvp_graph_embedding_forward, top_k=top_k))
    out = fwd(params, coords, coord_mask, padding_mask, confidence)
    jax.block_until_ready(out)

    (node_emb, edge_emb, edge_index, edge_mask) = out
    assert node_emb[0].shape == (B * L, 32) and node_emb[1].shape == (B * L, 8, 3)
    assert edge_emb[0].shape == (B * L * top_k, 32) and edge_emb[1].shape == (B * L * top_k, 4, 3)
    assert edge_index.shape == (2, B * L * top_k)
    assert bool(jnp.all(jnp.isfinite(node_emb[0]))) and bool(jnp.all(jnp.isfinite(edge_emb[0])))
    print("KERNEL_OK")
</pallas_src>

<mosaic_0001>
module attributes {stable_mosaic.version = 11 : i64} {
  func.func @kernel(%arg0: i32, %arg1: memref<37x128xbf16, #tpu.memory_space<vmem>>, %arg2: memref<12x37xf32, #tpu.memory_space<vmem>>, %arg3: memref<4x12xf32, #tpu.memory_space<vmem>>, %arg4: memref<32x37xf32, #tpu.memory_space<vmem>>, %arg5: memref<32x4xf32, #tpu.memory_space<vmem>>, %arg6: memref<32x1xf32, #tpu.memory_space<vmem>>, %arg7: memref<12x12xf32, #tpu.memory_space<vmem>>, %arg8: memref<4x12xf32, #tpu.memory_space<vmem>>, %arg9: memref<12x4xf32, #tpu.memory_space<vmem>>, %arg10: memref<1x32xf32, #tpu.memory_space<vmem>>, %arg11: memref<1x4xf32, #tpu.memory_space<vmem>>, %arg12: memref<32x1xf32, #tpu.memory_space<vmem>>, %arg13: memref<32x1xf32, #tpu.memory_space<vmem>>, %arg14: memref<32x128xbf16, #tpu.memory_space<vmem>>, %arg15: memref<12x128xbf16, #tpu.memory_space<vmem>>) attributes {dimension_semantics = [#tpu.dimension_semantics<parallel>], iteration_bounds = array<i64: 1>, scalar_prefetch = 0 : i64, scratch_operands = 0 : i64, tpu.core_type = #tpu.core_type<tc>, window_params = [{transform_indices = @transform_0, window_bounds = array<i64: 37, 128>}, {pipeline_mode = #tpu.pipeline_mode<synchronous>, transform_indices = @transform_1, window_bounds = array<i64: 12, 37>}, {pipeline_mode = #tpu.pipeline_mode<synchronous>, transform_indices = @transform_2, window_bounds = array<i64: 4, 12>}, {pipeline_mode = #tpu.pipeline_mode<synchronous>, transform_indices = @transform_3, window_bounds = array<i64: 32, 37>}, {pipeline_mode = #tpu.pipeline_mode<synchronous>, transform_indices = @transform_4, window_bounds = array<i64: 32, 4>}, {pipeline_mode = #tpu.pipeline_mode<synchronous>, transform_indices = @transform_5, window_bounds = array<i64: 32, 1>}, {pipeline_mode = #tpu.pipeline_mode<synchronous>, transform_indices = @transform_6, window_bounds = array<i64: 12, 12>}, {pipeline_mode = #tpu.pipeline_mode<synchronous>, transform_indices = @transform_7, window_bounds = array<i64: 4, 12>}, {pipeline_mode = #tpu.pipeline_mode<synchronous>, transform_indices = @transform_8, window_bounds = array<i64: 12, 4>}, {pipeline_mode = #tpu.pipeline_mode<synchronous>, transform_indices = @transform_9, window_bounds = array<i64: 1, 32>}, {pipeline_mode = #tpu.pipeline_mode<synchronous>, transform_indices = @transform_10, window_bounds = array<i64: 1, 4>}, {pipeline_mode = #tpu.pipeline_mode<synchronous>, transform_indices = @transform_11, window_bounds = array<i64: 32, 1>}, {pipeline_mode = #tpu.pipeline_mode<synchronous>, transform_indices = @transform_12, window_bounds = array<i64: 32, 1>}, {transform_indices = @transform_13, window_bounds = array<i64: 32, 128>}, {transform_indices = @transform_14, window_bounds = array<i64: 12, 128>}]} {
    %c0 = arith.constant 0 : index
    %c0_0 = arith.constant 0 : index
    %0 = vector.load %arg1[%c0, %c0_0] : memref<37x128xbf16, #tpu.memory_space<vmem>>, vector<37x128xbf16>
    %1 = arith.extf %0 : vector<37x128xbf16> to vector<37x128xf32>
    %c0_1 = arith.constant 0 : index
    %c0_2 = arith.constant 0 : index
    %2 = vector.load %arg2[%c0_1, %c0_2] : memref<12x37xf32, #tpu.memory_space<vmem>>, vector<12x37xf32>
    %cst = arith.constant dense<0.000000e+00> : vector<12x128xf32>
    %3 = tpu.matmul %2, %1, %cst {dimension_numbers = #tpu.dot_dimension_numbers<[1], [0], [0], [1], [0, 0, 1, 1], [], []>} : vector<12x37xf32>, vector<37x128xf32>, vector<12x128xf32> -> vector<12x128xf32>
    %c0_3 = arith.constant 0 : index
    %c0_4 = arith.constant 0 : index
    %4 = vector.load %arg3[%c0_3, %c0_4] : memref<4x12xf32, #tpu.memory_space<vmem>>, vector<4x12xf32>
    %5 = arith.mulf %3, %3 : vector<12x128xf32>
    %cst_5 = arith.constant dense<0.000000e+00> : vector<4x128xf32>
    %6 = tpu.matmul %4, %5, %cst_5 {dimension_numbers = #tpu.dot_dimension_numbers<[1], [0], [0], [1], [0, 0, 1, 1], [], []>} : vector<4x12xf32>, vector<12x128xf32>, vector<4x128xf32> -> vector<4x128xf32>
    %cst_6 = arith.constant 9.99999993E-9 : f32
    %7 = vector.broadcast %cst_6 : f32 to vector<4x128xf32>
    %8 = arith.maximumf %6, %7 : vector<4x128xf32>
    %9 = math.sqrt %8 : vector<4x128xf32>
    %c0_7 = arith.constant 0 : index
    %c0_8 = arith.constant 0 : index
    %10 = vector.load %arg4[%c0_7, %c0_8] : memref<32x37xf32, #tpu.memory_space<vmem>>, vector<32x37xf32>
    %cst_9 = arith.constant dense<0.000000e+00> : vector<32x128xf32>
    %11 = tpu.matmul %10, %1, %cst_9 {dimension_numbers = #tpu.dot_dimension_numbers<[1], [0], [0], [1], [0, 0, 1, 1], [], []>} : vector<32x37xf32>, vector<37x128xf32>, vector<32x128xf32> -> vector<32x128xf32>
    %c0_10 = arith.constant 0 : index
    %c0_11 = arith.constant 0 : index
    %12 = vector.load %arg5[%c0_10, %c0_11] : memref<32x4xf32, #tpu.memory_space<vmem>>, vector<32x4xf32>
    %cst_12 = arith.constant dense<0.000000e+00> : vector<32x128xf32>
    %13 = tpu.matmul %12, %9, %cst_12 {dimension_numbers = #tpu.dot_dimension_numbers<[1], [0], [0], [1], [0, 0, 1, 1], [], []>} : vector<32x4xf32>, vector<4x128xf32>, vector<32x128xf32> -> vector<32x128xf32>
    %14 = arith.addf %11, %13 : vector<32x128xf32>
    %c0_13 = arith.constant 0 : index
    %c0_14 = arith.constant 0 : index
    %15 = vector.load %arg6[%c0_13, %c0_14] : memref<32x1xf32, #tpu.memory_space<vmem>>, vector<32x1xf32>
    %16 = vector.broadcast %15 : vector<32x1xf32> to vector<32x128xf32>
    %17 = arith.addf %14, %16 : vector<32x128xf32>
    %c0_15 = arith.constant 0 : index
    %c0_16 = arith.constant 0 : index
    %18 = vector.load %arg7[%c0_15, %c0_16] : memref<12x12xf32, #tpu.memory_space<vmem>>, vector<12x12xf32>
    %cst_17 = arith.constant dense<0.000000e+00> : vector<12x128xf32>
    %19 = tpu.matmul %18, %3, %cst_17 {dimension_numbers = #tpu.dot_dimension_numbers<[1], [0], [0], [1], [0, 0, 1, 1], [], []>} : vector<12x12xf32>, vector<12x128xf32>, vector<12x128xf32> -> vector<12x128xf32>
    %c0_18 = arith.constant 0 : index
    %c0_19 = arith.constant 0 : index
    %20 = vector.load %arg8[%c0_18, %c0_19] : memref<4x12xf32, #tpu.memory_space<vmem>>, vector<4x12xf32>
    %21 = arith.mulf %19, %19 : vector<12x128xf32>
    %cst_20 = arith.constant dense<0.000000e+00> : vector<4x128xf32>
    %22 = tpu.matmul %20, %21, %cst_20 {dimension_numbers = #tpu.dot_dimension_numbers<[1], [0], [0], [1], [0, 0, 1, 1], [], []>} : vector<4x12xf32>, vector<12x128xf32>, vector<4x128xf32> -> vector<4x128xf32>
    %cst_21 = arith.constant 9.99999974E-5 : f32
    %23 = vector.broadcast %cst_21 : f32 to vector<4x128xf32>
    %24 = arith.maximumf %22, %23 : vector<4x128xf32>
    %cst_22 = arith.constant 2.000000e-04 : f32
    %25 = vector.broadcast %cst_22 : f32 to vector<4x128xf32>
    %26 = arith.cmpf ogt, %24, %25 : vector<4x128xf32>
    %27 = arith.extui %26 : vector<4x128xi1> to vector<4x128xi32>
    %28 = arith.sitofp %27 : vector<4x128xi32> to vector<4x128xf32>
    %c0_23 = arith.constant 0 : index
    %c0_24 = arith.constant 0 : index
    %29 = vector.load %arg11[%c0_23, %c0_24] : memref<1x4xf32, #tpu.memory_space<vmem>>, vector<1x4xf32>
    %30 = arith.mulf %24, %28 : vector<4x128xf32>
    %cst_25 = arith.constant dense<0.000000e+00> : vector<1x128xf32>
    %31 = tpu.matmul %29, %30, %cst_25 {dimension_numbers = #tpu.dot_dimension_numbers<[1], [0], [0], [1], [0, 0, 1, 1], [], []>} : vector<1x4xf32>, vector<4x128xf32>, vector<1x128xf32> -> vector<1x128xf32>
    %c0_26 = arith.constant 0 : index
    %c0_27 = arith.constant 0 : index
    %32 = vector.load %arg11[%c0_26, %c0_27] : memref<1x4xf32, #tpu.memory_space<vmem>>, vector<1x4xf32>
    %cst_28 = arith.constant dense<0.000000e+00> : vector<1x128xf32>
    %33 = tpu.matmul %32, %28, %cst_28 {dimension_numbers = #tpu.dot_dimension_numbers<[1], [0], [0], [1], [0, 0, 1, 1], [], []>} : vector<1x4xf32>, vector<4x128xf32>, vector<1x128xf32> -> vector<1x128xf32>
    %cst_29 = arith.constant 9.99999974E-5 : f32
    %34 = vector.broadcast %cst_29 : f32 to vector<1x128xf32>
    %35 = arith.addf %34, %33 : vector<1x128xf32>
    %36 = arith.divf %31, %35 : vector<1x128xf32>
    %cst_30 = arith.constant 9.99999974E-5 : f32
    %37 = vector.broadcast %cst_30 : f32 to vector<1x128xf32>
    %38 = arith.addf %36, %37 : vector<1x128xf32>
    %39 = math.rsqrt %38 : vector<1x128xf32>
    %40 = vector.broadcast %39 : vector<1x128xf32> to vector<4x128xf32>
    %41 = arith.mulf %28, %40 : vector<4x128xf32>
    %c0_31 = arith.constant 0 : index
    %c0_32 = arith.constant 0 : index
    %42 = vector.load %arg9[%c0_31, %c0_32] : memref<12x4xf32, #tpu.memory_space<vmem>>, vector<12x4xf32>
    %cst_33 = arith.constant dense<0.000000e+00> : vector<12x128xf32>
    %43 = tpu.matmul %42, %41, %cst_33 {dimension_numbers = #tpu.dot_dimension_numbers<[1], [0], [0], [1], [0, 0, 1, 1], [], []>} : vector<12x4xf32>, vector<4x128xf32>, vector<12x128xf32> -> vector<12x128xf32>
    %44 = arith.mulf %43, %19 : vector<12x128xf32>
    %c0_34 = arith.constant 0 : index
    %c0_35 = arith.constant 0 : index
    %45 = vector.load %arg10[%c0_34, %c0_35] : memref<1x32xf32, #tpu.memory_space<vmem>>, vector<1x32xf32>
    %cst_36 = arith.constant dense<0.000000e+00> : vector<1x128xf32>
    %46 = tpu.matmul %45, %17, %cst_36 {dimension_numbers = #tpu.dot_dimension_numbers<[1], [0], [0], [1], [0, 0, 1, 1], [], []>} : vector<1x32xf32>, vector<32x128xf32>, vector<1x128xf32> -> vector<1x128xf32>
    %47 = vector.broadcast %46 : vector<1x128xf32> to vector<32x128xf32>
    %48 = arith.subf %17, %47 : vector<32x128xf32>
    %c0_37 = arith.constant 0 : index
    %c0_38 = arith.constant 0 : index
    %49 = vector.load %arg10[%c0_37, %c0_38] : memref<1x32xf32, #tpu.memory_space<vmem>>, vector<1x32xf32>
    %50 = arith.mulf %48, %48 : vector<32x128xf32>
    %cst_39 = arith.constant dense<0.000000e+00> : vector<1x128xf32>
    %51 = tpu.matmul %49, %50, %cst_39 {dimension_numbers = #tpu.dot_dimension_numbers<[1], [0], [0], [1], [0, 0, 1, 1], [], []>} : vector<1x32xf32>, vector<32x128xf32>, vector<1x128xf32> -> vector<1x128xf32>
    %cst_40 = arith.constant 9.99999974E-6 : f32
    %52 = vector.broadcast %cst_40 : f32 to vector<1x128xf32>
    %53 = arith.addf %51, %52 : vector<1x128xf32>
    %54 = math.rsqrt %53 : vector<1x128xf32>
    %55 = vector.broadcast %54 : vector<1x128xf32> to vector<32x128xf32>
    %56 = arith.mulf %48, %55 : vector<32x128xf32>
    %c0_41 = arith.constant 0 : index
    %c0_42 = arith.constant 0 : index
    %57 = vector.load %arg12[%c0_41, %c0_42] : memref<32x1xf32, #tpu.memory_space<vmem>>, vector<32x1xf32>
    %58 = vector.broadcast %57 : vector<32x1xf32> to vector<32x128xf32>
    %59 = arith.mulf %56, %58 : vector<32x128xf32>
    %c0_43 = arith.constant 0 : index
    %c0_44 = arith.constant 0 : index
    %60 = vector.load %arg13[%c0_43, %c0_44] : memref<32x1xf32, #tpu.memory_space<vmem>>, vector<32x1xf32>
    %61 = vector.broadcast %60 : vector<32x1xf32> to vector<32x128xf32>
    %62 = arith.addf %59, %61 : vector<32x128xf32>
    %63 = arith.truncf %62 : vector<32x128xf32> to vector<32x128xbf16>
    %c0_45 = arith.constant 0 : index
    %c0_46 = arith.constant 0 : index
    %64 = vector.load %arg14[%c0_45, %c0_46] : memref<32x128xbf16, #tpu.memory_space<vmem>>, vector<32x128xbf16>
    tpu.vector_store %arg14[%c0_45, %c0_46], %63 {strides = array<i32>} : memref<32x128xbf16, #tpu.memory_space<vmem>>, vector<32x128xbf16>,
    %65 = arith.truncf %44 : vector<12x128xf32> to vector<12x128xbf16>
    %c0_47 = arith.constant 0 : index
    %c0_48 = arith.constant 0 : index
    %66 = vector.load %arg15[%c0_47, %c0_48] : memref<12x128xbf16, #tpu.memory_space<vmem>>, vector<12x128xbf16>
    tpu.vector_store %arg15[%c0_47, %c0_48], %65 {strides = array<i32>} : memref<12x128xbf16, #tpu.memory_space<vmem>>, vector<12x128xbf16>,
    return
  }
  func.func @transform_0(%arg0: i32) -> (i32, i32) {
    %c0_i32 = arith.constant 0 : i32
    %c0_i32_0 = arith.constant 0 : i32
    return %c0_i32, %arg0 : i32, i32
  }
  func.func @transform_1(%arg0: i32) -> (i32, i32) {
    %c0_i32 = arith.constant 0 : i32
    %c0_i32_0 = arith.constant 0 : i32
    %c0_i32_1 = arith.constant 0 : i32
    return %c0_i32, %c0_i32_0 : i32, i32
  }
  func.func @transform_2(%arg0: i32) -> (i32, i32) {
    %c0_i32 = arith.constant 0 : i32
    %c0_i32_0 = arith.constant 0 : i32
    %c0_i32_1 = arith.constant 0 : i32
    return %c0_i32, %c0_i32_0 : i32, i32
  }
  func.func @transform_3(%arg0: i32) -> (i32, i32) {
    %c0_i32 = arith.constant 0 : i32
    %c0_i32_0 = arith.constant 0 : i32
    %c0_i32_1 = arith.constant 0 : i32
    return %c0_i32, %c0_i32_0 : i32, i32
  }
  func.func @transform_4(%arg0: i32) -> (i32, i32) {
    %c0_i32 = arith.constant 0 : i32
    %c0_i32_0 = arith.constant 0 : i32
    %c0_i32_1 = arith.constant 0 : i32
    return %c0_i32, %c0_i32_0 : i32, i32
  }
  func.func @transform_5(%arg0: i32) -> (i32, i32) {
    %c0_i32 = arith.constant 0 : i32
    %c0_i32_0 = arith.constant 0 : i32
    %c0_i32_1 = arith.constant 0 : i32
    return %c0_i32, %c0_i32_0 : i32, i32
  }
  func.func @transform_6(%arg0: i32) -> (i32, i32) {
    %c0_i32 = arith.constant 0 : i32
    %c0_i32_0 = arith.constant 0 : i32
    %c0_i32_1 = arith.constant 0 : i32
    return %c0_i32, %c0_i32_0 : i32, i32
  }
  func.func @transform_7(%arg0: i32) -> (i32, i32) {
    %c0_i32 = arith.constant 0 : i32
    %c0_i32_0 = arith.constant 0 : i32
    %c0_i32_1 = arith.constant 0 : i32
    return %c0_i32, %c0_i32_0 : i32, i32
  }
  func.func @transform_8(%arg0: i32) -> (i32, i32) {
    %c0_i32 = arith.constant 0 : i32
    %c0_i32_0 = arith.constant 0 : i32
    %c0_i32_1 = arith.constant 0 : i32
    return %c0_i32, %c0_i32_0 : i32, i32
  }
  func.func @transform_9(%arg0: i32) -> (i32, i32) {
    %c0_i32 = arith.constant 0 : i32
    %c0_i32_0 = arith.constant 0 : i32
    %c0_i32_1 = arith.constant 0 : i32
    return %c0_i32, %c0_i32_0 : i32, i32
  }
  func.func @transform_10(%arg0: i32) -> (i32, i32) {
    %c0_i32 = arith.constant 0 : i32
    %c0_i32_0 = arith.constant 0 : i32
    %c0_i32_1 = arith.constant 0 : i32
    return %c0_i32, %c0_i32_0 : i32, i32
  }
  func.func @transform_11(%arg0: i32) -> (i32, i32) {
    %c0_i32 = arith.constant 0 : i32
    %c0_i32_0 = arith.constant 0 : i32
    %c0_i32_1 = arith.constant 0 : i32
    return %c0_i32, %c0_i32_0 : i32, i32
  }
  func.func @transform_12(%arg0: i32) -> (i32, i32) {
    %c0_i32 = arith.constant 0 : i32
    %c0_i32_0 = arith.constant 0 : i32
    %c0_i32_1 = arith.constant 0 : i32
    return %c0_i32, %c0_i32_0 : i32, i32
  }
  func.func @transform_13(%arg0: i32) -> (i32, i32) {
    %c0_i32 = arith.constant 0 : i32
    %c0_i32_0 = arith.constant 0 : i32
    return %c0_i32, %arg0 : i32, i32
  }
  func.func @transform_14(%arg0: i32) -> (i32, i32) {
    %c0_i32 = arith.constant 0 : i32
    %c0_i32_0 = arith.constant 0 : i32
    return %c0_i32, %arg0 : i32, i32
  }
}

module attributes {stable_mosaic.version = 11 : i64} {
  func.func @kernel(%arg0: i32, %arg1: memref<32x128xbf16, #tpu.memory_space<vmem>>, %arg2: memref<24x32xf32, #tpu.memory_space<vmem>>, %arg3: memref<8x24xf32, #tpu.memory_space<vmem>>, %arg4: memref<32x32xf32, #tpu.memory_space<vmem>>, %arg5: memref<32x8xf32, #tpu.memory_space<vmem>>, %arg6: memref<32x1xf32, #tpu.memory_space<vmem>>, %arg7: memref<24x24xf32, #tpu.memory_space<vmem>>, %arg8: memref<8x24xf32, #tpu.memory_space<vmem>>, %arg9: memref<24x8xf32, #tpu.memory_space<vmem>>, %arg10: memref<1x32xf32, #tpu.memory_space<vmem>>, %arg11: memref<1x8xf32, #tpu.memory_space<vmem>>, %arg12: memref<32x1xf32, #tpu.memory_space<vmem>>, %arg13: memref<32x1xf32, #tpu.memory_space<vmem>>, %arg14: memref<32x32xf32, #tpu.memory_space<vmem>>, %arg15: memref<32x128xbf16, #tpu.memory_space<vmem>>, %arg16: memref<24x128xbf16, #tpu.memory_space<vmem>>) attributes {dimension_semantics = [#tpu.dimension_semantics<parallel>], iteration_bounds = array<i64: 1>, scalar_prefetch = 0 : i64, scratch_operands = 0 : i64, tpu.core_type = #tpu.core_type<tc>, window_params = [{transform_indices = @transform_0, window_bounds = array<i64: 32, 128>}, {pipeline_mode = #tpu.pipeline_mode<synchronous>, transform_indices = @transform_1, window_bounds = array<i64: 24, 32>}, {pipeline_mode = #tpu.pipeline_mode<synchronous>, transform_indices = @transform_2, window_bounds = array<i64: 8, 24>}, {pipeline_mode = #tpu.pipeline_mode<synchronous>, transform_indices = @transform_3, window_bounds = array<i64: 32, 32>}, {pipeline_mode = #tpu.pipeline_mode<synchronous>, transform_indices = @transform_4, window_bounds = array<i64: 32, 8>}, {pipeline_mode = #tpu.pipeline_mode<synchronous>, transform_indices = @transform_5, window_bounds = array<i64: 32, 1>}, {pipeline_mode = #tpu.pipeline_mode<synchronous>, transform_indices = @transform_6, window_bounds = array<i64: 24, 24>}, {pipeline_mode = #tpu.pipeline_mode<synchronous>, transform_indices = @transform_7, window_bounds = array<i64: 8, 24>}, {pipeline_mode = #tpu.pipeline_mode<synchronous>, transform_indices = @transform_8, window_bounds = array<i64: 24, 8>}, {pipeline_mode = #tpu.pipeline_mode<synchronous>, transform_indices = @transform_9, window_bounds = array<i64: 1, 32>}, {pipeline_mode = #tpu.pipeline_mode<synchronous>, transform_indices = @transform_10, window_bounds = array<i64: 1, 8>}, {pipeline_mode = #tpu.pipeline_mode<synchronous>, transform_indices = @transform_11, window_bounds = array<i64: 32, 1>}, {pipeline_mode = #tpu.pipeline_mode<synchronous>, transform_indices = @transform_12, window_bounds = array<i64: 32, 1>}, {pipeline_mode = #tpu.pipeline_mode<synchronous>, transform_indices = @transform_13, window_bounds = array<i64: 32, 32>}, {transform_indices = @transform_14, window_bounds = array<i64: 32, 128>}, {transform_indices = @transform_15, window_bounds = array<i64: 24, 128>}]} {
    %c0 = arith.constant 0 : index
    %c0_0 = arith.constant 0 : index
    %0 = vector.load %arg1[%c0, %c0_0] : memref<32x128xbf16, #tpu.memory_space<vmem>>, vector<32x128xbf16>
    %1 = arith.extf %0 : vector<32x128xbf16> to vector<32x128xf32>
    %c0_1 = arith.constant 0 : index
    %c0_2 = arith.constant 0 : index
    %2 = vector.load %arg2[%c0_1, %c0_2] : memref<24x32xf32, #tpu.memory_space<vmem>>, vector<24x32xf32>
    %cst = arith.constant dense<0.000000e+00> : vector<24x128xf32>
    %3 = tpu.matmul %2, %1, %cst {dimension_numbers = #tpu.dot_dimension_numbers<[1], [0], [0], [1], [0, 0, 1, 1], [], []>} : vector<24x32xf32>, vector<32x128xf32>, vector<24x128xf32> -> vector<24x128xf32>
    %c0_3 = arith.constant 0 : index
    %c0_4 = arith.constant 0 : index
    %4 = vector.load %arg3[%c0_3, %c0_4] : memref<8x24xf32, #tpu.memory_space<vmem>>, vector<8x24xf32>
    %5 = arith.mulf %3, %3 : vector<24x128xf32>
    %cst_5 = arith.constant dense<0.000000e+00> : vector<8x128xf32>
    %6 = tpu.matmul %4, %5, %cst_5 {dimension_numbers = #tpu.dot_dimension_numbers<[1], [0], [0], [1], [0, 0, 1, 1], [], []>} : vector<8x24xf32>, vector<24x128xf32>, vector<8x128xf32> -> vector<8x128xf32>
    %cst_6 = arith.constant 9.99999993E-9 : f32
    %7 = vector.broadcast %cst_6 : f32 to vector<8x128xf32>
    %8 = arith.maximumf %6, %7 : vector<8x128xf32>
    %9 = math.sqrt %8 : vector<8x128xf32>
    %c0_7 = arith.constant 0 : index
    %c0_8 = arith.constant 0 : index
    %10 = vector.load %arg4[%c0_7, %c0_8] : memref<32x32xf32, #tpu.memory_space<vmem>>, vector<32x32xf32>
    %cst_9 = arith.constant dense<0.000000e+00> : vector<32x128xf32>
    %11 = tpu.matmul %10, %1, %cst_9 {dimension_numbers = #tpu.dot_dimension_numbers<[1], [0], [0], [1], [0, 0, 1, 1], [], []>} : vector<32x32xf32>, vector<32x128xf32>, vector<32x128xf32> -> vector<32x128xf32>
    %c0_10 = arith.constant 0 : index
    %c0_11 = arith.constant 0 : index
    %12 = vector.load %arg5[%c0_10, %c0_11] : memref<32x8xf32, #tpu.memory_space<vmem>>, vector<32x8xf32>
    %cst_12 = arith.constant dense<0.000000e+00> : vector<32x128xf32>
    %13 = tpu.matmul %12, %9, %cst_12 {dimension_numbers = #tpu.dot_dimension_numbers<[1], [0], [0], [1], [0, 0, 1, 1], [], []>} : vector<32x8xf32>, vector<8x128xf32>, vector<32x128xf32> -> vector<32x128xf32>
    %14 = arith.addf %11, %13 : vector<32x128xf32>
    %c0_13 = arith.constant 0 : index
    %c0_14 = arith.constant 0 : index
    %15 = vector.load %arg6[%c0_13, %c0_14] : memref<32x1xf32, #tpu.memory_space<vmem>>, vector<32x1xf32>
    %16 = vector.broadcast %15 : vector<32x1xf32> to vector<32x128xf32>
    %17 = arith.addf %14, %16 : vector<32x128xf32>
    %c0_15 = arith.constant 0 : index
    %c0_16 = arith.constant 0 : index
    %18 = vector.load %arg7[%c0_15, %c0_16] : memref<24x24xf32, #tpu.memory_space<vmem>>, vector<24x24xf32>
    %cst_17 = arith.constant dense<0.000000e+00> : vector<24x128xf32>
    %19 = tpu.matmul %18, %3, %cst_17 {dimension_numbers = #tpu.dot_dimension_numbers<[1], [0], [0], [1], [0, 0, 1, 1], [], []>} : vector<24x24xf32>, vector<24x128xf32>, vector<24x128xf32> -> vector<24x128xf32>
    %c0_18 = arith.constant 0 : index
    %c0_19 = arith.constant 0 : index
    %20 = vector.load %arg8[%c0_18, %c0_19] : memref<8x24xf32, #tpu.memory_space<vmem>>, vector<8x24xf32>
    %21 = arith.mulf %19, %19 : vector<24x128xf32>
    %cst_20 = arith.constant dense<0.000000e+00> : vector<8x128xf32>
    %22 = tpu.matmul %20, %21, %cst_20 {dimension_numbers = #tpu.dot_dimension_numbers<[1], [0], [0], [1], [0, 0, 1, 1], [], []>} : vector<8x24xf32>, vector<24x128xf32>, vector<8x128xf32> -> vector<8x128xf32>
    %cst_21 = arith.constant 9.99999974E-5 : f32
    %23 = vector.broadcast %cst_21 : f32 to vector<8x128xf32>
    %24 = arith.maximumf %22, %23 : vector<8x128xf32>
    %cst_22 = arith.constant 2.000000e-04 : f32
    %25 = vector.broadcast %cst_22 : f32 to vector<8x128xf32>
    %26 = arith.cmpf ogt, %24, %25 : vector<8x128xf32>
    %27 = arith.extui %26 : vector<8x128xi1> to vector<8x128xi32>
    %28 = arith.sitofp %27 : vector<8x128xi32> to vector<8x128xf32>
    %c0_23 = arith.constant 0 : index
    %c0_24 = arith.constant 0 : index
    %29 = vector.load %arg11[%c0_23, %c0_24] : memref<1x8xf32, #tpu.memory_space<vmem>>, vector<1x8xf32>
    %30 = arith.mulf %24, %28 : vector<8x128xf32>
    %cst_25 = arith.constant dense<0.000000e+00> : vector<1x128xf32>
    %31 = tpu.matmul %29, %30, %cst_25 {dimension_numbers = #tpu.dot_dimension_numbers<[1], [0], [0], [1], [0, 0, 1, 1], [], []>} : vector<1x8xf32>, vector<8x128xf32>, vector<1x128xf32> -> vector<1x128xf32>
    %c0_26 = arith.constant 0 : index
    %c0_27 = arith.constant 0 : index
    %32 = vector.load %arg11[%c0_26, %c0_27] : memref<1x8xf32, #tpu.memory_space<vmem>>, vector<1x8xf32>
    %cst_28 = arith.constant dense<0.000000e+00> : vector<1x128xf32>
    %33 = tpu.matmul %32, %28, %cst_28 {dimension_numbers = #tpu.dot_dimension_numbers<[1], [0], [0], [1], [0, 0, 1, 1], [], []>} : vector<1x8xf32>, vector<8x128xf32>, vector<1x128xf32> -> vector<1x128xf32>
    %cst_29 = arith.constant 9.99999974E-5 : f32
    %34 = vector.broadcast %cst_29 : f32 to vector<1x128xf32>
    %35 = arith.addf %34, %33 : vector<1x128xf32>
    %36 = arith.divf %31, %35 : vector<1x128xf32>
    %cst_30 = arith.constant 9.99999974E-5 : f32
    %37 = vector.broadcast %cst_30 : f32 to vector<1x128xf32>
    %38 = arith.addf %36, %37 : vector<1x128xf32>
    %39 = math.rsqrt %38 : vector<1x128xf32>
    %40 = vector.broadcast %39 : vector<1x128xf32> to vector<8x128xf32>
    %41 = arith.mulf %28, %40 : vector<8x128xf32>
    %c0_31 = arith.constant 0 : index
    %c0_32 = arith.constant 0 : index
    %42 = vector.load %arg9[%c0_31, %c0_32] : memref<24x8xf32, #tpu.memory_space<vmem>>, vector<24x8xf32>
    %cst_33 = arith.constant dense<0.000000e+00> : vector<24x128xf32>
    %43 = tpu.matmul %42, %41, %cst_33 {dimension_numbers = #tpu.dot_dimension_numbers<[1], [0], [0], [1], [0, 0, 1, 1], [], []>} : vector<24x8xf32>, vector<8x128xf32>, vector<24x128xf32> -> vector<24x128xf32>
    %44 = arith.mulf %43, %19 : vector<24x128xf32>
    %c0_34 = arith.constant 0 : index
    %c0_35 = arith.constant 0 : index
    %45 = vector.load %arg10[%c0_34, %c0_35] : memref<1x32xf32, #tpu.memory_space<vmem>>, vector<1x32xf32>
    %cst_36 = arith.constant dense<0.000000e+00> : vector<1x128xf32>
    %46 = tpu.matmul %45, %17, %cst_36 {dimension_numbers = #tpu.dot_dimension_numbers<[1], [0], [0], [1], [0, 0, 1, 1], [], []>} : vector<1x32xf32>, vector<32x128xf32>, vector<1x128xf32> -> vector<1x128xf32>
    %47 = vector.broadcast %46 : vector<1x128xf32> to vector<32x128xf32>
    %48 = arith.subf %17, %47 : vector<32x128xf32>
    %c0_37 = arith.constant 0 : index
    %c0_38 = arith.constant 0 : index
    %49 = vector.load %arg10[%c0_37, %c0_38] : memref<1x32xf32, #tpu.memory_space<vmem>>, vector<1x32xf32>
    %50 = arith.mulf %48, %48 : vector<32x128xf32>
    %cst_39 = arith.constant dense<0.000000e+00> : vector<1x128xf32>
    %51 = tpu.matmul %49, %50, %cst_39 {dimension_numbers = #tpu.dot_dimension_numbers<[1], [0], [0], [1], [0, 0, 1, 1], [], []>} : vector<1x32xf32>, vector<32x128xf32>, vector<1x128xf32> -> vector<1x128xf32>
    %cst_40 = arith.constant 9.99999974E-6 : f32
    %52 = vector.broadcast %cst_40 : f32 to vector<1x128xf32>
    %53 = arith.addf %51, %52 : vector<1x128xf32>
    %54 = math.rsqrt %53 : vector<1x128xf32>
    %55 = vector.broadcast %54 : vector<1x128xf32> to vector<32x128xf32>
    %56 = arith.mulf %48, %55 : vector<32x128xf32>
    %c0_41 = arith.constant 0 : index
    %c0_42 = arith.constant 0 : index
    %57 = vector.load %arg12[%c0_41, %c0_42] : memref<32x1xf32, #tpu.memory_space<vmem>>, vector<32x1xf32>
    %58 = vector.broadcast %57 : vector<32x1xf32> to vector<32x128xf32>
    %59 = arith.mulf %56, %58 : vector<32x128xf32>
    %c0_43 = arith.constant 0 : index
    %c0_44 = arith.constant 0 : index
    %60 = vector.load %arg13[%c0_43, %c0_44] : memref<32x1xf32, #tpu.memory_space<vmem>>, vector<32x1xf32>
    %61 = vector.broadcast %60 : vector<32x1xf32> to vector<32x128xf32>
    %62 = arith.addf %59, %61 : vector<32x128xf32>
    %c0_45 = arith.constant 0 : index
    %c0_46 = arith.constant 0 : index
    %63 = vector.load %arg14[%c0_45, %c0_46] : memref<32x32xf32, #tpu.memory_space<vmem>>, vector<32x32xf32>
    %cst_47 = arith.constant dense<0.000000e+00> : vector<32x128xf32>
    %64 = tpu.matmul %63, %1, %cst_47 {dimension_numbers = #tpu.dot_dimension_numbers<[1], [0], [0], [1], [0, 0, 1, 1], [], []>} : vector<32x32xf32>, vector<32x128xf32>, vector<32x128xf32> -> vector<32x128xf32>
    %65 = arith.addf %62, %64 : vector<32x128xf32>
    %66 = arith.truncf %65 : vector<32x128xf32> to vector<32x128xbf16>
    %c0_48 = arith.constant 0 : index
    %c0_49 = arith.constant 0 : index
    %67 = vector.load %arg15[%c0_48, %c0_49] : memref<32x128xbf16, #tpu.memory_space<vmem>>, vector<32x128xbf16>
    tpu.vector_store %arg15[%c0_48, %c0_49], %66 {strides = array<i32>} : memref<32x128xbf16, #tpu.memory_space<vmem>>, vector<32x128xbf16>,
    %68 = arith.truncf %44 : vector<24x128xf32> to vector<24x128xbf16>
    %c0_50 = arith.constant 0 : index
    %c0_51 = arith.constant 0 : index
    %69 = vector.load %arg16[%c0_50, %c0_51] : memref<24x128xbf16, #tpu.memory_space<vmem>>, vector<24x128xbf16>
    tpu.vector_store %arg16[%c0_50, %c0_51], %68 {strides = array<i32>} : memref<24x128xbf16, #tpu.memory_space<vmem>>, vector<24x128xbf16>,
    return
  }
  func.func @transform_0(%arg0: i32) -> (i32, i32) {
    %c0_i32 = arith.constant 0 : i32
    %c0_i32_0 = arith.constant 0 : i32
    return %c0_i32, %arg0 : i32, i32
  }
  func.func @transform_1(%arg0: i32) -> (i32, i32) {
    %c0_i32 = arith.constant 0 : i32
    %c0_i32_0 = arith.constant 0 : i32
    %c0_i32_1 = arith.constant 0 : i32
    return %c0_i32, %c0_i32_0 : i32, i32
  }
  func.func @transform_2(%arg0: i32) -> (i32, i32) {
    %c0_i32 = arith.constant 0 : i32
    %c0_i32_0 = arith.constant 0 : i32
    %c0_i32_1 = arith.constant 0 : i32
    return %c0_i32, %c0_i32_0 : i32, i32
  }
  func.func @transform_3(%arg0: i32) -> (i32, i32) {
    %c0_i32 = arith.constant 0 : i32
    %c0_i32_0 = arith.constant 0 : i32
    %c0_i32_1 = arith.constant 0 : i32
    return %c0_i32, %c0_i32_0 : i32, i32
  }
  func.func @transform_4(%arg0: i32) -> (i32, i32) {
    %c0_i32 = arith.constant 0 : i32
    %c0_i32_0 = arith.constant 0 : i32
    %c0_i32_1 = arith.constant 0 : i32
    return %c0_i32, %c0_i32_0 : i32, i32
  }
  func.func @transform_5(%arg0: i32) -> (i32, i32) {
    %c0_i32 = arith.constant 0 : i32
    %c0_i32_0 = arith.constant 0 : i32
    %c0_i32_1 = arith.constant 0 : i32
    return %c0_i32, %c0_i32_0 : i32, i32
  }
  func.func @transform_6(%arg0: i32) -> (i32, i32) {
    %c0_i32 = arith.constant 0 : i32
    %c0_i32_0 = arith.constant 0 : i32
    %c0_i32_1 = arith.constant 0 : i32
    return %c0_i32, %c0_i32_0 : i32, i32
  }
  func.func @transform_7(%arg0: i32) -> (i32, i32) {
    %c0_i32 = arith.constant 0 : i32
    %c0_i32_0 = arith.constant 0 : i32
    %c0_i32_1 = arith.constant 0 : i32
    return %c0_i32, %c0_i32_0 : i32, i32
  }
  func.func @transform_8(%arg0: i32) -> (i32, i32) {
    %c0_i32 = arith.constant 0 : i32
    %c0_i32_0 = arith.constant 0 : i32
    %c0_i32_1 = arith.constant 0 : i32
    return %c0_i32, %c0_i32_0 : i32, i32
  }
  func.func @transform_9(%arg0: i32) -> (i32, i32) {
    %c0_i32 = arith.constant 0 : i32
    %c0_i32_0 = arith.constant 0 : i32
    %c0_i32_1 = arith.constant 0 : i32
    return %c0_i32, %c0_i32_0 : i32, i32
  }
  func.func @transform_10(%arg0: i32) -> (i32, i32) {
    %c0_i32 = arith.constant 0 : i32
    %c0_i32_0 = arith.constant 0 : i32
    %c0_i32_1 = arith.constant 0 : i32
    return %c0_i32, %c0_i32_0 : i32, i32
  }
  func.func @transform_11(%arg0: i32) -> (i32, i32) {
    %c0_i32 = arith.constant 0 : i32
    %c0_i32_0 = arith.constant 0 : i32
    %c0_i32_1 = arith.constant 0 : i32
    return %c0_i32, %c0_i32_0 : i32, i32
  }
  func.func @transform_12(%arg0: i32) -> (i32, i32) {
    %c0_i32 = arith.constant 0 : i32
    %c0_i32_0 = arith.constant 0 : i32
    %c0_i32_1 = arith.constant 0 : i32
    return %c0_i32, %c0_i32_0 : i32, i32
  }
  func.func @transform_13(%arg0: i32) -> (i32, i32) {
    %c0_i32 = arith.constant 0 : i32
    %c0_i32_0 = arith.constant 0 : i32
    %c0_i32_1 = arith.constant 0 : i32
    return %c0_i32, %c0_i32_0 : i32, i32
  }
  func.func @transform_14(%arg0: i32) -> (i32, i32) {
    %c0_i32 = arith.constant 0 : i32
    %c0_i32_0 = arith.constant 0 : i32
    return %c0_i32, %arg0 : i32, i32
  }
  func.func @transform_15(%arg0: i32) -> (i32, i32) {
    %c0_i32 = arith.constant 0 : i32
    %c0_i32_0 = arith.constant 0 : i32
    return %c0_i32, %arg0 : i32, i32
  }
}

</mosaic_0001>

<bundles_post_ra>
// kernel: gvp_graph_embedding_forward.3
= control target key start
LH: loop header
LB: loop body
LE: loop exit
PB: predicated region body
PF: predicated region fallthrough
CT: control target
= control target key end

     0   :  { %vm65_vm0 = vcmask 1044480   ;;  %vm58_vm1 = vcmask 302080   ;;  %vm99_vm2 = vcmask 1043456   ;;  %vm95_vm3 = vcmask 97280   ;;  %s882_s0 = inlined_call_operand.vmem [shape: bf16[37,128], index: 0, kind: input, shape index: {}]   ;;  %s883_s1 = inlined_call_operand.vmem [shape: f32[12,37], index: 1, kind: input, shape index: {}]   ;;  %s884_s2 = inlined_call_operand.vmem [shape: f32[4,12], index: 2, kind: input, shape index: {}, may-alias: {2,7}]   ;;  %s885_s6 = inlined_call_operand.vmem [shape: f32[12,12], index: 6, kind: input, shape index: {}]   ;;  %s886_s3 = inlined_call_operand.vmem [shape: f32[32,37], index: 3, kind: input, shape index: {}]   ;;  %s887_s5 = inlined_call_operand.vmem [shape: f32[32,1], index: 5, kind: input, shape index: {}]   ;;  %s888_s7 = inlined_call_operand.vmem [shape: f32[4,12], index: 7, kind: input, shape index: {}, may-alias: {2,7}]   ;;  %s889_s11 = inlined_call_operand.vmem [shape: f32[32,1], index: 11, kind: input, shape index: {}]   ;;  %s890_s4 = inlined_call_operand.vmem [shape: f32[32,4], index: 4, kind: input, shape index: {}]   ;;  %s891_s12 = inlined_call_operand.vmem [shape: f32[32,1], index: 12, kind: input, shape index: {}]   ;;  %s892_s10 = inlined_call_operand.vmem [shape: f32[1,4], index: 10, kind: input, shape index: {}]   ;;  %s893_s9 = inlined_call_operand.vmem [shape: f32[1,32], index: 9, kind: input, shape index: {}]   ;;  %s894_s8 = inlined_call_operand.vmem [shape: f32[12,4], index: 8, kind: input, shape index: {}]   ;;  %s895_s14 = inlined_call_operand.vmem [shape: bf16[12,128], index: 14, kind: output, shape index: {1}]   ;;  %s896_s13 = inlined_call_operand.vmem [shape: bf16[32,128], index: 13, kind: output, shape index: {0}]  }
   0x1   :  { %v50_v0 = vld [vmem:[%s882_s0 + $0x10] sm:$0x7]  ;;  %v633_v1 = vld [vmem:[%s882_s0 + $0x8] sm:$0xff]   ;;  %v616_v4 = vld [vmem:[%s882_s0] sm:$0xff]   ;;  %v648_v22 = vmov 0   ;;  %vm144_vm6 = vcmask 31744  }
   0x2   :  { %v55_v2 = vunpack.c.l.bf16 %v50_v0  ;;  %v622_v3 = vunpack.c.h.bf16 %v633_v1  ;;  %v621_v5 = vunpack.c.l.bf16 %v633_v1  ;;  %v618_v6 = vunpack.c.h.bf16 %v616_v4  ;;  %v56_v8 = vld [vmem:[%s883_s1] sm:$0xff]  ;;  %v57_v9 = vld [vmem:[%s883_s1 + $0x8] sm:$0xf]  ;;  %638 = vset.pattern.permute.xlu1 %v648_v22  ;;  %637 = vset.pattern.permute.xlu0 %v648_v22  ;;  %v233_v23 = vld [vmem:[%s887_s5 + $0x18] sm:$0xff] }
   0x3   :  { %v617_v7 = vunpack.c.l.bf16 %v616_v4  ;;  %v92_v14 = vld [vmem:[%s884_s2] sm:$0xf]  ;;  %v259_v16 = vld [vmem:[%s885_s6 + $0x8] sm:$0xf]  ;;  %639 = vset.pattern.permute.xlu2 %v648_v22  ;;  %251 = vperm.xlu0 %637, %v233_v23   ;;  %v138_v26 = vld [vmem:[%s886_s3 + $0x10] sm:$0xff]  ;;  %v649_v55 = vmov 0.0  }
   0x4   :  { %585 = vmatpush.msk.msra.mxu0 %vm65_vm0, %v55_v2  ;;  %595 = vmatpush.msk.msra.mxu3 %vm65_vm0, %v55_v2  ;;  %v258_v15 = vld [vmem:[%s885_s6] sm:$0xff]  ;;  %v137_v20 = vld [vmem:[%s886_s3 + $0x8] sm:$0xff]  ;;  %v232_v31 = vld [vmem:[%s887_s5 + $0x10] sm:$0xff]  ;;  %vm441_vm8 = vcmask 261120  }
   0x5   :  { %v136_v17 = vld [vmem:[%s886_s3] sm:$0xff]  ;;  %v231_v21 = vld [vmem:[%s887_s5 + $0x8] sm:$0xff]  ;;  %v139_v36 = vld [vmem:[%s886_s3 + $0x18] sm:$0xff] }
   0x6   :  { %81 = vmatpush.msra.mxu0 %v622_v3  ;;  %213 = vmatpush.msra.mxu3 %v622_v3  ;;  %v230_v29 = vld [vmem:[%s887_s5] sm:$0xff]  ;;  %v512_v39 = vld [vmem:[%s889_s11 + $0x18] sm:$0xff]  ;;  %v511_v41 = vld [vmem:[%s889_s11 + $0x10] sm:$0xff] }
   0x7   :  { %241 = vperm.xlu1 %638, %v231_v21   ;;  %v292_v38 = vld [vmem:[%s888_s7] sm:$0xf]  ;;  %v539_v46 = vld [vmem:[%s891_s12 + $0x10] sm:$0xff]  ;;  %v538_v47 = vld [vmem:[%s891_s12 + $0x8] sm:$0xff] }
   0x8   :  { %82 = vmatpush.msra.mxu0 %v621_v5  ;;  %214 = vmatpush.msra.mxu3 %v621_v5  ;;  %v140_v44 = vld [vmem:[%s890_s4] sm:$0xff]  ;;  %v141_v48 = vld [vmem:[%s890_s4 + $0x8] sm:$0xff]  ;;  %v142_v49 = vld [vmem:[%s890_s4 + $0x10] sm:$0xff] }
   0x9   :  { %v143_v50 = vld [vmem:[%s890_s4 + $0x18] sm:$0xff]  ;;  %v325_v54 = vld [vmem:[%s892_s10] sm:$0x1] }
   0xa   :  { %83 = vmatpush.msra.mxu0 %v618_v6  ;;  %215 = vmatpush.msra.mxu3 %v618_v6 }
   0xb   :  { %246 = vperm.xlu0 %637, %v232_v31   ;;  %v510_v31 = vld [vmem:[%s889_s11 + $0x8] sm:$0xff] }
   0xc   :  { %84 = vmatpush.msra.mxu0 %v617_v7  ;;  %216 = vmatpush.msra.mxu3 %v617_v7 }
   0xd   :  { %586 = vmatmul.msk.f32.vlgmr.msra.gmra.mxu0 %vm58_vm1, %v56_v8  ;;  %596 = vmatmul.msk.f32.vlgmr.msra.gmra.mxu3 %vm58_vm1, %v136_v17 }
   0xf   :  { %236 = vperm.xlu1 %638, %v230_v29  }
  0x13   :  { %525 = vperm.xlu0 %637, %v511_v41  }
  0x15   :  { %587 = vmatmul.msk.f32.gmra.mxu0 %vm58_vm1, %v57_v9  ;;  %597 = vmatmul.msk.f32.gmra.mxu3 %vm58_vm1, %v137_v20 }
  0x17   :  { %530 = vperm.xlu1 %638, %v512_v39  }
  0x1b   :  { %548 = vperm.xlu0 %637, %v538_v47  }
  0x1d   :  { %598 = vmatmul.msk.f32.gmra.mxu3 %vm58_vm1, %v138_v26 }
  0x1f   :  { %553 = vperm.xlu1 %638, %v539_v46  }
  0x25   :  { %599 = vmatmul.msk.f32.gmra.mxu3 %vm58_vm1, %v139_v36 }
  0x75   :  { %v252_v63 = vpop.permute.xlu0 %251 }
  0x79   :  { %v242_v0 = vpop.permute.xlu1 %241 }
  0x7d   :  { %v247_v7 = vpop.permute.xlu0 %246 }
  0x8a   :  { %v86_v10 = vpop.f32.mrf.mxu0 }
  0x8b   :  { %v93_v13 = vmul.f32 %v86_v10, %v86_v10 }
  0x90   :  { %v218_v53 = vpop.f32.mrf.mxu3 }
  0x92   :  { %v89_v11 = vpop.f32.mrf.mxu0 }
  0x93   :  { %v94_v12 = vmul.f32 %v89_v11, %v89_v11 }
  0x95   :  { %588 = vmatpush.msk.msra.mxu1 %vm99_vm2, %v94_v12 }
  0x97   :  { %118 = vmatpush.msra.mxu1 %v93_v13  ;;  %v840_v13 = vld [vmem:[%s893_s9] sm:$0x1] }
  0x98   :  { %589 = vmatmul.msk.f32.vlgmr.msra.gmra.mxu1 %vm95_vm3, %v92_v14  ;;  %v221_v59 = vpop.f32.mrf.mxu3 }
  0x99   :  { %600 = vmatpush.msk.msrb.mxu1 %vm99_vm2, %v89_v11 }
  0x9b   :  { %284 = vmatpush.msrb.mxu1 %v86_v10  ;;  %v237_v10 = vpop.permute.xlu1 %236 }
  0xa0   :  { %601 = vmatmul.msk.f32.vlgmr.msrb.gmra.mxu1 %vm95_vm3, %v258_v15  ;;  %v224_v61 = vpop.f32.mrf.mxu3 }
  0xa8   :  { %602 = vmatmul.msk.f32.gmra.mxu1 %vm95_vm3, %v259_v16  ;;  %v227_v1 = vpop.f32.mrf.mxu3 }
 0x115   :  { %v120_v18 = vpop.f32.mrf.mxu1 }
 0x116   :  { %v123_v19 = vmax.f32 %v120_v18, 1e-08 }
 0x118   :  { %640 = vrsqrt.f32 %v123_v19  ;;  %vm131_vm4 = vcmp.eq.f32.partialorder %v123_v19, inf  ;;  %v134_v42 = vand.u32 2147483648, %v123_v19  ;;  %vm133_vm5 = vcmp.eq.f32.partialorder %v123_v19, 0.0 }
 0x11d   :  { %v770_v24 = vpop.f32.mrf.mxu1 }
 0x11e   :  { %v641_v25 = vpop.eup %640  ;;  %v293_v35 = vmul.f32 %v770_v24, %v770_v24 }
 0x11f   :  { %v125_v27 = vmul.f32 %v641_v25, %v123_v19 }
 0x121   :  { %v126_v28 = vmul.f32 %v641_v25, %v125_v27 }
 0x123   :  { %v127_v30 = vmul.f32 0.5, %v126_v28 }
 0x125   :  { %v782_v32 = vpop.f32.mrf.mxu1  ;;  %v128_v33 = vsub.f32 1.5, %v127_v30  ;;  %v509_v30 = vld [vmem:[%s889_s11] sm:$0xff] }
 0x126   :  { %v294_v34 = vmul.f32 %v782_v32, %v782_v32  ;;  %515 = vperm.xlu2 %639, %v509_v30  }
 0x127   :  { %v129_v37 = vmul.f32 %v641_v25, %v128_v33 }
 0x128   :  { %603 = vmatpush.msk.msrb.mxu0 %vm99_vm2, %v294_v34 }
 0x129   :  { %v130_v40 = vmul.f32 %v129_v37, %v123_v19 }
 0x12a   :  { %316 = vmatpush.msrb.mxu0 %v293_v35 }
 0x12b   :  { %604 = vmatmul.msk.f32.vlgmr.msrb.gmra.mxu0 %vm95_vm3, %v292_v38  ;;  %v132_v43 = vsel %vm131_vm4, %v123_v19, %v130_v40  ;;  %v537_v38 = vld [vmem:[%s891_s12] sm:$0xff] }
 0x12c   :  { %v135_v45 = vsel %vm133_vm5, %v134_v42, %v132_v43 }
 0x12d   :  { %590 = vmatpush.msk.msra.mxu2 %vm99_vm2, %v135_v45 }
 0x12e   :  { %591 = vmatmul.msk.f32.vlgmr.msra.gmra.mxu2 %vm144_vm6, %v140_v44  ;;  %520 = vperm.xlu2 %639, %v510_v31  }
 0x136   :  { %592 = vmatmul.msk.f32.gmra.mxu2 %vm144_vm6, %v141_v48  ;;  %543 = vperm.xlu2 %639, %v537_v38   ;;  %v404_v48 = vld [vmem:[%s894_s8] sm:$0xff] }
 0x13e   :  { %593 = vmatmul.msk.f32.gmra.mxu2 %vm144_vm6, %v142_v49 }
 0x146   :  { %594 = vmatmul.msk.f32.gmra.mxu2 %vm144_vm6, %v143_v50  ;;  %v540_v50 = vld [vmem:[%s891_s12 + $0x18] sm:$0xff] }
 0x147   :  { %558 = vperm.xlu2 %639, %v540_v50  }
 0x1a8   :  { %v318_v51 = vpop.f32.mrf.mxu0 }
 0x1a9   :  { %v321_v52 = vmax.f32 %v318_v51, 0.0001 }
 0x1ab   :  { %vm322_vm7 = vcmp.gt.f32.partialorder %v321_v52, 0.0002 }
 0x1ac   :  { %v829_v56 = vsel %vm322_vm7, 1.0, %v649_v55  ;;  %v405_v55 = vld [vmem:[%s894_s8 + $0x8] sm:$0xf] }
 0x1ad   :  { %v326_v57 = vmul.f32 %v829_v56, %v321_v52  ;;  %608 = vmatpush.msk.msra.mxu0 %vm99_vm2, %v829_v56 }
 0x1ae   :  { %609 = vmatmul.msk.f32.vlgmr.msra.gmra.mxu0 %vm144_vm6, %v325_v54 }
 0x1af   :  { %606 = vmatpush.msk.msra.mxu1 %vm99_vm2, %v326_v57 }
 0x1b0   :  { %607 = vmatmul.msk.f32.vlgmr.msra.gmra.mxu1 %vm144_vm6, %v325_v54 }
 0x1b1   :  { %v177_v58 = vpop.f32.mrf.mxu2 }
 0x1b2   :  { %v219_v8 = vadd.f32 %v218_v53, %v177_v58 }
 0x1b4   :  { %v254_v12 = vadd.f32 %v237_v10, %v219_v8 }
 0x1b9   :  { %v180_v60 = vpop.f32.mrf.mxu2 }
 0x1ba   :  { %v222_v5 = vadd.f32 %v221_v59, %v180_v60 }
 0x1bc   :  { %v255_v11 = vadd.f32 %v242_v0, %v222_v5  ;;  %v526_v5 = vpop.permute.xlu0 %525 }
 0x1c1   :  { %v183_v62 = vpop.f32.mrf.mxu2 }
 0x1c2   :  { %v225_v3 = vadd.f32 %v224_v61, %v183_v62 }
 0x1c4   :  { %v256_v9 = vadd.f32 %v247_v7, %v225_v3 }
 0x1c9   :  { %v186_v2 = vpop.f32.mrf.mxu2 }
 0x1ca   :  { %v228_v4 = vadd.f32 %v227_v1, %v186_v2 }
 0x1cc   :  { %v257_v6 = vadd.f32 %v252_v63, %v228_v4 }
 0x1ce   :  { %457 = vmatpush.msrb.mxu1 %v257_v6 }
 0x1d0   :  { %458 = vmatpush.msrb.mxu1 %v256_v9 }
 0x1d2   :  { %459 = vmatpush.msrb.mxu1 %v255_v11 }
 0x1d4   :  { %460 = vmatpush.msrb.mxu1 %v254_v12 }
 0x1d5   :  { %613 = vmatmul.msk.f32.vlgmr.msrb.gmra.mxu1 %vm441_vm8, %v840_v13 }
 0x22b   :  { %v373_v14 = vpop.f32.mrf.mxu0 }
 0x22c   :  { %v374_v15 = vadd.f32 0.0001, %v373_v14 }
 0x22d   :  { %v350_v25 = vpop.f32.mrf.mxu1 }
 0x22e   :  { %642 = vrcp.f32 %v374_v15  ;;  %v387_v18 = vand.u32 2147483648, %v374_v15  ;;  %vm381_vm9 = vweird.f32 %v374_v15  ;;  %v385_v20 = vand.u32 2147483647, %v374_v15 }
 0x230   :  { %v388_v22 = vor.u32 1.1754944e-38, %v387_v18  ;;  %vm386_vm12 = vcmp.eq.f32.partialorder %v385_v20, 8.507059e+37 }
 0x234   :  { %v643_v16 = vpop.eup %642 }
 0x235   :  { %v377_v17 = vmul.f32 %v643_v16, %v374_v15  ;;  %vm382_vm10 = vweird.f32 %v643_v16  ;;  %v549_v15 = vpop.permute.xlu0 %548 }
 0x236   :  { %vm383_vm11 = vmor %vm381_vm9, %vm382_vm10 }
 0x237   :  { %v378_v19 = vsub.f32 1.0, %v377_v17 }
 0x239   :  { %v379_v21 = vmul.f32 %v643_v16, %v378_v19 }
 0x23b   :  { %v380_v23 = vadd.f32 %v643_v16, %v379_v21 }
 0x23d   :  { %v384_v26 = vsel %vm383_vm11, %v643_v16, %v380_v23 }
 0x23e   :  { %v389_v27 = vsel %vm386_vm12, %v388_v22, %v384_v26 }
 0x23f   :  { %v390_v28 = vmul.f32 %v389_v27, %v350_v25 }
 0x241   :  { %v391_v29 = vadd.f32 0.0001, %v390_v28 }
 0x243   :  { %644 = vrsqrt.f32 %v391_v29  ;;  %vm398_vm14 = vweird.f32 %v391_v29 }
 0x249   :  { %v645_v33 = vpop.eup %644 }
 0x24a   :  { %v393_v34 = vmul.f32 %v645_v33, %v391_v29  ;;  %vm399_vm13 = vweird.f32 %v645_v33 }
 0x24b   :  { %vm400_vm15 = vmor %vm398_vm14, %vm399_vm13 }
 0x24c   :  { %v394_v35 = vmul.f32 %v645_v33, %v393_v34 }
 0x24e   :  { %v395_v36 = vmul.f32 0.5, %v394_v35 }
 0x250   :  { %v396_v37 = vsub.f32 1.5, %v395_v36 }
 0x252   :  { %v397_v39 = vmul.f32 %v645_v33, %v396_v37  ;;  %v462_v40 = vpop.f32.mrf.mxu1 }
 0x253   :  { %v465_v41 = vperm.slane %v462_v40, 0 }
 0x254   :  { %v401_v42 = vsel %vm400_vm15, %v645_v33, %v397_v39 }
 0x255   :  { %v469_v43 = vsub.f32 %v257_v6, %v465_v41  ;;  %v402_v44 = vperm.slane %v401_v42, 0  ;;  %v468_v45 = vsub.f32 %v256_v9, %v465_v41  ;;  %v467_v49 = vsub.f32 %v255_v11, %v465_v41  ;;  %v531_v6 = vpop.permute.xlu1 %530 }
 0x256   :  { %v466_v52 = vsub.f32 %v254_v12, %v465_v41 }
 0x257   :  { %v403_v46 = vmul.f32 %v829_v56, %v402_v44  ;;  %v473_v47 = vmul.f32 %v469_v43, %v469_v43  ;;  %v472_v51 = vmul.f32 %v468_v45, %v468_v45  ;;  %v471_v53 = vmul.f32 %v467_v49, %v467_v49  ;;  %v516_v56 = vpop.permute.xlu2 %515 }
 0x258   :  { %v470_v54 = vmul.f32 %v466_v52, %v466_v52 }
 0x259   :  { %610 = vmatpush.msk.msrb.mxu2 %vm99_vm2, %v403_v46  ;;  %486 = vmatpush.msrb.mxu0 %v473_v47 }
 0x25a   :  { %611 = vmatmul.msk.f32.vlgmr.msrb.gmra.mxu2 %vm144_vm6, %v404_v48 }
 0x25b   :  { %487 = vmatpush.msrb.mxu0 %v472_v51 }
 0x25d   :  { %488 = vmatpush.msrb.mxu0 %v471_v53  ;;  %v554_v20 = vpop.permute.xlu1 %553 }
 0x25f   :  { %489 = vmatpush.msrb.mxu0 %v470_v54  ;;  %v521_v62 = vpop.permute.xlu2 %520 }
 0x260   :  { %614 = vmatmul.msk.f32.vlgmr.msrb.gmra.mxu0 %vm441_vm8, %v840_v13 }
 0x262   :  { %612 = vmatmul.msk.f32.gmra.mxu2 %vm144_vm6, %v405_v55 }
 0x267   :  { %v544_v8 = vpop.permute.xlu2 %543 }
 0x26f   :  { %v559_v21 = vpop.permute.xlu2 %558 }
 0x2dd   :  { %v432_v57 = vpop.f32.mrf.mxu2  ;;  %v491_v58 = vpop.f32.mrf.mxu0 }
 0x2de   :  { %v438_v59 = vmul.f32 %v432_v57, %v770_v24  ;;  %v492_v60 = vadd.f32 1e-05, %v491_v58 }
 0x2e0   :  { %v573_v61 = vpack.c.bf16 %v438_v59, %v438_v59  ;;  %646 = vrsqrt.f32 %v492_v60  ;;  %vm500_vm1 = vweird.f32 %v492_v60 }
 0x2e2   :  { %575 = vst [vmem:[%s895_s14] sm:$0xf] %v573_v61 }
 0x2e5   :  { %v435_v63 = vpop.f32.mrf.mxu2 }
 0x2e6   :  { %v647_v0 = vpop.eup %646  ;;  %v439_v1 = vmul.f32 %v435_v63, %v782_v32 }
 0x2e7   :  { %v495_v2 = vmul.f32 %v647_v0, %v492_v60  ;;  %vm501_vm0 = vweird.f32 %v647_v0 }
 0x2e8   :  { %v574_v3 = vpack.c.bf16 %v439_v1, %v439_v1  ;;  %vm502_vm2 = vmor %vm500_vm1, %vm501_vm0 }
 0x2e9   :  { %v496_v4 = vmul.f32 %v647_v0, %v495_v2 }
 0x2ea   :  { %576 = vst [vmem:[%s895_s14 + $0x4] sm:$0x3] %v574_v3 }
 0x2eb   :  { %v497_v24 = vmul.f32 0.5, %v496_v4 }
 0x2ed   :  { %v498_v7 = vsub.f32 1.5, %v497_v24 }
 0x2ef   :  { %v499_v9 = vmul.f32 %v647_v0, %v498_v7 }
 0x2f1   :  { %v503_v10 = vsel %vm502_vm2, %v647_v0, %v499_v9 }
 0x2f2   :  { %v504_v11 = vperm.slane %v503_v10, 0 }
 0x2f4   :  { %v505_v12 = vmul.f32 %v504_v11, %v466_v52  ;;  %v506_v32 = vmul.f32 %v504_v11, %v467_v49  ;;  %v507_v13 = vmul.f32 %v504_v11, %v468_v45  ;;  %v508_v14 = vmul.f32 %v504_v11, %v469_v43 }
 0x2f6   :  { %v533_v16 = vmul.f32 %v516_v56, %v505_v12  ;;  %v534_v17 = vmul.f32 %v521_v62, %v506_v32  ;;  %v535_v18 = vmul.f32 %v526_v5, %v507_v13  ;;  %v536_v19 = vmul.f32 %v531_v6, %v508_v14 }
 0x2f8   :  { %v561_v22 = vadd.f32 %v544_v8, %v533_v16  ;;  %v562_v23 = vadd.f32 %v549_v15, %v534_v17  ;;  %v563_v25 = vadd.f32 %v554_v20, %v535_v18  ;;  %v564_v26 = vadd.f32 %v559_v21, %v536_v19 }
 0x2fa   :  { %v626_v27 = vpack.c.bf16 %v562_v23, %v561_v22  ;;  %v631_v28 = vpack.c.bf16 %v564_v26, %v563_v25 }
 0x2fc   :  { %627 = vst [vmem:[%s896_s13] sm:$0xff] %v626_v27  }
 0x2fd   :  { %634 = vst [vmem:[%s896_s13 + $0x8] sm:$0xff] %v631_v28  }

// kernel: gvp_graph_embedding_forward.2
= control target key start
LH: loop header
LB: loop body
LE: loop exit
PB: predicated region body
PF: predicated region fallthrough
CT: control target
= control target key end

     0   :  { %vm60_vm0 = vcmask 261120   ;;  %vm100_vm1 = vcmask 195584   ;;  %v705_v30 = vmov 0   ;;  %vm145_vm4 = vcmask 64512   ;;  %s1015_s0 = inlined_call_operand.vmem [shape: bf16[32,128], index: 0, kind: input, shape index: {}]   ;;  %s1016_s1 = inlined_call_operand.vmem [shape: f32[24,32], index: 1, kind: input, shape index: {}]   ;;  %s1017_s3 = inlined_call_operand.vmem [shape: f32[32,32], index: 3, kind: input, shape index: {}]   ;;  %s1018_s6 = inlined_call_operand.vmem [shape: f32[24,24], index: 6, kind: input, shape index: {}]   ;;  %s1019_s2 = inlined_call_operand.vmem [shape: f32[8,24], index: 2, kind: input, shape index: {}, may-alias: {2,7}]   ;;  %s1020_s5 = inlined_call_operand.vmem [shape: f32[32,1], index: 5, kind: input, shape index: {}]   ;;  %s1021_s4 = inlined_call_operand.vmem [shape: f32[32,8], index: 4, kind: input, shape index: {}]   ;;  %s1022_s11 = inlined_call_operand.vmem [shape: f32[32,1], index: 11, kind: input, shape index: {}]   ;;  %s1023_s12 = inlined_call_operand.vmem [shape: f32[32,1], index: 12, kind: input, shape index: {}]   ;;  %s1024_s7 = inlined_call_operand.vmem [shape: f32[8,24], index: 7, kind: input, shape index: {}, may-alias: {2,7}]   ;;  %s1025_s9 = inlined_call_operand.vmem [shape: f32[1,32], index: 9, kind: input, shape index: {}]   ;;  %s1026_s10 = inlined_call_operand.vmem [shape: f32[1,8], index: 10, kind: input, shape index: {}]   ;;  %s1027_s13 = inlined_call_operand.vmem [shape: f32[32,32], index: 13, kind: input, shape index: {}]   ;;  %s1028_s8 = inlined_call_operand.vmem [shape: f32[24,8], index: 8, kind: input, shape index: {}]   ;;  %s1029_s14 = inlined_call_operand.vmem [shape: bf16[32,128], index: 14, kind: output, shape index: {0}]   ;;  %s1030_s15 = inlined_call_operand.vmem [shape: bf16[24,128], index: 15, kind: output, shape index: {1}]  }
   0x1   :  { %v686_v0 = vld [vmem:[%s1015_s0 + $0x8] sm:$0xff]   ;;  %v664_v1 = vld [vmem:[%s1015_s0] sm:$0xff]   ;;  %v59_v8 = vld [vmem:[%s1016_s1 + $0x10] sm:$0xff]  ;;  %695 = vset.pattern.permute.xlu1 %v705_v30  ;;  %694 = vset.pattern.permute.xlu0 %v705_v30 }
   0x2   :  { %v794_v2 = vunpack.c.h.bf16 %v686_v0  ;;  %v796_v3 = vunpack.c.l.bf16 %v686_v0  ;;  %v799_v4 = vunpack.c.h.bf16 %v664_v1  ;;  %v803_v5 = vunpack.c.l.bf16 %v664_v1  ;;  %v57_v6 = vld [vmem:[%s1016_s1] sm:$0xff]  ;;  %v58_v7 = vld [vmem:[%s1016_s1 + $0x8] sm:$0xff]  ;;  %v139_v11 = vld [vmem:[%s1017_s3 + $0x10] sm:$0xff]  ;;  %696 = vset.pattern.permute.xlu2 %v705_v30 }
   0x3   :  { %v137_v9 = vld [vmem:[%s1017_s3] sm:$0xff]  ;;  %v138_v10 = vld [vmem:[%s1017_s3 + $0x8] sm:$0xff]  ;;  %v140_v13 = vld [vmem:[%s1017_s3 + $0x18] sm:$0xff] }
   0x4   :  { %82 = vmatpush.msra.mxu0 %v794_v2  ;;  %211 = vmatpush.msra.mxu3 %v794_v2  ;;  %v257_v18 = vld [vmem:[%s1018_s6 + $0x8] sm:$0xff]  ;;  %v96_v20 = vld [vmem:[%s1019_s2] sm:$0xff]  ;;  %v258_v21 = vld [vmem:[%s1018_s6 + $0x10] sm:$0xff] }
   0x5   :  { %v256_v22 = vld [vmem:[%s1018_s6] sm:$0xff]  ;;  %v229_v29 = vld [vmem:[%s1020_s5 + $0x8] sm:$0xff]  ;;  %v231_v38 = vld [vmem:[%s1020_s5 + $0x18] sm:$0xff] }
   0x6   :  { %83 = vmatpush.msra.mxu0 %v796_v3  ;;  %212 = vmatpush.msra.mxu3 %v796_v3  ;;  %v228_v33 = vld [vmem:[%s1020_s5] sm:$0xff]  ;;  %v230_v49 = vld [vmem:[%s1020_s5 + $0x10] sm:$0xff]  ;;  %v510_v50 = vld [vmem:[%s1022_s11 + $0x18] sm:$0xff] }
   0x7   :  { %239 = vperm.xlu1 %695, %v229_v29   ;;  %249 = vperm.xlu0 %694, %v231_v38   ;;  %v141_v44 = vld [vmem:[%s1021_s4] sm:$0xff]  ;;  %v142_v52 = vld [vmem:[%s1021_s4 + $0x8] sm:$0xff]  ;;  %v509_v53 = vld [vmem:[%s1022_s11 + $0x10] sm:$0xff] }
   0x8   :  { %84 = vmatpush.msra.mxu0 %v799_v4  ;;  %213 = vmatpush.msra.mxu3 %v799_v4  ;;  %v537_v54 = vld [vmem:[%s1023_s12 + $0x10] sm:$0xff]  ;;  %v536_v56 = vld [vmem:[%s1023_s12 + $0x8] sm:$0xff]  ;;  %v144_v57 = vld [vmem:[%s1021_s4 + $0x18] sm:$0xff] }
   0x9   :  { %v143_v55 = vld [vmem:[%s1021_s4 + $0x10] sm:$0xff]  ;;  %v294_v58 = vld [vmem:[%s1024_s7] sm:$0xff] }
   0xa   :  { %85 = vmatpush.msra.mxu0 %v803_v5  ;;  %214 = vmatpush.msra.mxu3 %v803_v5 }
   0xb   :  { %634 = vmatmul.msk.f32.vlgmr.msra.gmra.mxu0 %vm60_vm0, %v57_v6  ;;  %642 = vmatmul.msk.f32.vlgmr.msra.gmra.mxu3 %vm60_vm0, %v137_v9 }
   0xf   :  { %234 = vperm.xlu1 %695, %v228_v33   ;;  %244 = vperm.xlu0 %694, %v230_v49  }
  0x13   :  { %635 = vmatmul.msk.f32.gmra.mxu0 %vm60_vm0, %v58_v7  ;;  %643 = vmatmul.msk.f32.gmra.mxu3 %vm60_vm0, %v138_v10 }
  0x17   :  { %528 = vperm.xlu1 %695, %v510_v50   ;;  %523 = vperm.xlu0 %694, %v509_v53  }
  0x1b   :  { %636 = vmatmul.msk.f32.gmra.mxu0 %vm60_vm0, %v59_v8  ;;  %644 = vmatmul.msk.f32.gmra.mxu3 %vm60_vm0, %v139_v11 }
  0x1f   :  { %551 = vperm.xlu1 %695, %v537_v54   ;;  %546 = vperm.xlu0 %694, %v536_v56  }
  0x23   :  { %645 = vmatmul.msk.f32.gmra.mxu3 %vm60_vm0, %v140_v13 }
  0x79   :  { %v250_v62 = vpop.permute.xlu0 %249  ;;  %v240_v63 = vpop.permute.xlu1 %239 }
  0x81   :  { %v245_v9 = vpop.permute.xlu0 %244 }
  0x88   :  { %v87_v12 = vpop.f32.mrf.mxu0 }
  0x89   :  { %v97_v19 = vmul.f32 %v87_v12, %v87_v12 }
  0x8e   :  { %v854_v23 = vpop.f32.mrf.mxu3 }
  0x90   :  { %v90_v14 = vpop.f32.mrf.mxu0 }
  0x91   :  { %v98_v17 = vmul.f32 %v90_v14, %v90_v14 }
  0x96   :  { %v856_v24 = vpop.f32.mrf.mxu3 }
  0x98   :  { %v93_v15 = vpop.f32.mrf.mxu0 }
  0x99   :  { %688 = vmatpush.msrb.mxu3 %v93_v15  ;;  %v99_v16 = vmul.f32 %v93_v15, %v93_v15 }
  0x9b   :  { %117 = vmatpush.msra.mxu1 %v99_v16  ;;  %689 = vmatpush.msrb.mxu3 %v90_v14 }
  0x9d   :  { %118 = vmatpush.msra.mxu1 %v98_v17  ;;  %690 = vmatpush.msrb.mxu3 %v87_v12  ;;  %v439_v17 = vld [vmem:[%s1025_s9] sm:$0x1] }
  0x9e   :  { %647 = vmatmul.msk.f32.vlgmr.msrb.gmra.mxu3 %vm100_vm1, %v257_v18  ;;  %v858_v25 = vpop.f32.mrf.mxu3  ;;  %v325_v18 = vld [vmem:[%s1026_s10] sm:$0x1] }
  0x9f   :  { %119 = vmatpush.msra.mxu1 %v97_v19  ;;  %v706_v19 = vmov 0.0  }
  0xa0   :  { %637 = vmatmul.msk.f32.vlgmr.msra.gmra.mxu1 %vm100_vm1, %v96_v20 }
  0xa1   :  { %281 = vmatpush.msrb.mxu1 %v93_v15 }
  0xa3   :  { %282 = vmatpush.msrb.mxu1 %v90_v14 }
  0xa5   :  { %283 = vmatpush.msrb.mxu1 %v87_v12  ;;  %v235_v12 = vpop.permute.xlu1 %234 }
  0xa6   :  { %648 = vmatmul.msk.f32.gmra.mxu3 %vm100_vm1, %v258_v21  ;;  %v860_v26 = vpop.f32.mrf.mxu3  ;;  %v707_v21 = vmov 1.0  }
  0xa8   :  { %646 = vmatmul.msk.f32.vlgmr.msrb.gmra.mxu1 %vm100_vm1, %v256_v22 }
 0x11d   :  { %v121_v27 = vpop.f32.mrf.mxu1 }
 0x11e   :  { %v124_v28 = vmax.f32 %v121_v27, 1e-08 }
 0x120   :  { %697 = vrsqrt.f32 %v124_v28  ;;  %vm132_vm2 = vcmp.eq.f32.partialorder %v124_v28, inf  ;;  %v135_v42 = vand.u32 2147483648, %v124_v28  ;;  %vm134_vm3 = vcmp.eq.f32.partialorder %v124_v28, 0.0 }
 0x121   :  { %v865_v32 = vpop.f32.mrf.mxu3 }
 0x122   :  { %v296_v48 = vmul.f32 %v865_v32, %v865_v32 }
 0x125   :  { %v880_v47 = vpop.f32.mrf.mxu1 }
 0x126   :  { %v698_v31 = vpop.eup %697  ;;  %v295_v51 = vmul.f32 %v880_v47, %v880_v47 }
 0x127   :  { %v126_v34 = vmul.f32 %v698_v31, %v124_v28 }
 0x129   :  { %v127_v35 = vmul.f32 %v698_v31, %v126_v34  ;;  %v873_v40 = vpop.f32.mrf.mxu3 }
 0x12a   :  { %v297_v45 = vmul.f32 %v873_v40, %v873_v40 }
 0x12b   :  { %v128_v36 = vmul.f32 0.5, %v127_v35 }
 0x12d   :  { %v129_v37 = vsub.f32 1.5, %v128_v36 }
 0x12f   :  { %v130_v39 = vmul.f32 %v698_v31, %v129_v37  ;;  %v565_v31 = vld [vmem:[%s1027_s13 + $0x10] sm:$0xff] }
 0x131   :  { %v131_v41 = vmul.f32 %v130_v39, %v124_v28 }
 0x133   :  { %v133_v43 = vsel %vm132_vm2, %v124_v28, %v131_v41 }
 0x134   :  { %v136_v46 = vsel %vm134_vm3, %v135_v42, %v133_v43  ;;  %v507_v42 = vld [vmem:[%s1022_s11] sm:$0xff] }
 0x135   :  { %173 = vmatpush.msra.mxu2 %v136_v46  ;;  %513 = vperm.xlu2 %696, %v507_v42  }
 0x136   :  { %638 = vmatmul.msk.f32.vlgmr.msra.gmra.mxu2 %vm145_vm4, %v141_v44 }
 0x137   :  { %314 = vmatpush.msrb.mxu2 %v297_v45 }
 0x139   :  { %315 = vmatpush.msrb.mxu2 %v296_v48  ;;  %v566_v48 = vld [vmem:[%s1027_s13 + $0x18] sm:$0xff] }
 0x13b   :  { %316 = vmatpush.msrb.mxu2 %v295_v51 }
 0x13e   :  { %639 = vmatmul.msk.f32.gmra.mxu2 %vm145_vm4, %v142_v52  ;;  %v508_v52 = vld [vmem:[%s1022_s11 + $0x8] sm:$0xff] }
 0x13f   :  { %518 = vperm.xlu2 %696, %v508_v52  }
 0x146   :  { %640 = vmatmul.msk.f32.gmra.mxu2 %vm145_vm4, %v143_v55  ;;  %v535_v55 = vld [vmem:[%s1023_s12] sm:$0xff] }
 0x147   :  { %541 = vperm.xlu2 %696, %v535_v55  }
 0x14e   :  { %641 = vmatmul.msk.f32.gmra.mxu2 %vm145_vm4, %v144_v57 }
 0x156   :  { %649 = vmatmul.msk.f32.vlgmr.msrb.gmra.mxu2 %vm100_vm1, %v294_v58 }
 0x1b9   :  { %v175_v59 = vpop.f32.mrf.mxu2 }
 0x1ba   :  { %v217_v10 = vadd.f32 %v854_v23, %v175_v59  ;;  %v563_v23 = vld [vmem:[%s1027_s13] sm:$0xff]  ;;  %v538_v59 = vld [vmem:[%s1023_s12 + $0x18] sm:$0xff] }
 0x1bb   :  { %556 = vperm.xlu2 %696, %v538_v59  }
 0x1bc   :  { %v252_v15 = vadd.f32 %v235_v12, %v217_v10 }
 0x1c1   :  { %v178_v60 = vpop.f32.mrf.mxu2 }
 0x1c2   :  { %v220_v7 = vadd.f32 %v856_v24, %v178_v60 }
 0x1c4   :  { %v253_v13 = vadd.f32 %v240_v63, %v220_v7  ;;  %v514_v7 = vpop.permute.xlu2 %513 }
 0x1c9   :  { %v181_v61 = vpop.f32.mrf.mxu2 }
 0x1ca   :  { %v223_v1 = vadd.f32 %v858_v25, %v181_v61 }
 0x1cc   :  { %v254_v11 = vadd.f32 %v245_v9, %v223_v1  ;;  %v399_v1 = vld [vmem:[%s1028_s8 + $0x8] sm:$0xff] }
 0x1d1   :  { %v184_v0 = vpop.f32.mrf.mxu2 }
 0x1d2   :  { %v226_v6 = vadd.f32 %v860_v26, %v184_v0  ;;  %v398_v0 = vld [vmem:[%s1028_s8] sm:$0xff] }
 0x1d4   :  { %v255_v8 = vadd.f32 %v250_v62, %v226_v6  ;;  %v400_v6 = vld [vmem:[%s1028_s8 + $0x10] sm:$0xff] }
 0x1d6   :  { %455 = vmatpush.msra.mxu3 %v255_v8 }
 0x1d8   :  { %456 = vmatpush.msra.mxu3 %v254_v11 }
 0x1d9   :  { %v318_v14 = vpop.f32.mrf.mxu2 }
 0x1da   :  { %v321_v16 = vmax.f32 %v318_v14, 0.0001  ;;  %457 = vmatpush.msra.mxu3 %v253_v13 }
 0x1dc   :  { %vm322_vm5 = vcmp.gt.f32.partialorder %v321_v16, 0.0002  ;;  %458 = vmatpush.msra.mxu3 %v252_v15 }
 0x1dd   :  { %v928_v20 = vsel %vm322_vm5, 1.0, %v706_v19  ;;  %652 = vmatpush.msk.msra.mxu1 %vm322_vm5, %v707_v21  ;;  %657 = vmatmul.msk.f32.vlgmr.msra.gmra.mxu3 %vm60_vm0, %v439_v17 }
 0x1de   :  { %v326_v22 = vmul.f32 %v928_v20, %v321_v16  ;;  %653 = vmatmul.msk.f32.vlgmr.msra.gmra.mxu1 %vm145_vm4, %v325_v18 }
 0x1df   :  { %591 = vmatpush.msrb.mxu1 %v794_v2  ;;  %v564_v2 = vld [vmem:[%s1027_s13 + $0x8] sm:$0xff] }
 0x1e0   :  { %345 = vmatpush.msra.mxu2 %v326_v22 }
 0x1e1   :  { %651 = vmatmul.msk.f32.vlgmr.msra.gmra.mxu2 %vm145_vm4, %v325_v18  ;;  %592 = vmatpush.msrb.mxu1 %v796_v3  ;;  %v529_v18 = vpop.permute.xlu1 %528 }
 0x1e3   :  { %593 = vmatpush.msrb.mxu1 %v799_v4 }
 0x1e5   :  { %594 = vmatpush.msrb.mxu1 %v803_v5 }
 0x1e6   :  { %659 = vmatmul.msk.f32.vlgmr.msrb.gmra.mxu1 %vm60_vm0, %v563_v23 }
 0x1ee   :  { %660 = vmatmul.msk.f32.gmra.mxu1 %vm60_vm0, %v564_v2 }
 0x1f6   :  { %661 = vmatmul.msk.f32.gmra.mxu1 %vm60_vm0, %v565_v31 }
 0x1fe   :  { %662 = vmatmul.msk.f32.gmra.mxu1 %vm60_vm0, %v566_v48 }
 0x25b   :  { %v367_v24 = vpop.f32.mrf.mxu1 }
 0x25c   :  { %v368_v25 = vadd.f32 0.0001, %v367_v24 }
 0x25e   :  { %699 = vrcp.f32 %v368_v25  ;;  %v381_v37 = vand.u32 2147483648, %v368_v25  ;;  %v379_v39 = vand.u32 2147483647, %v368_v25  ;;  %vm375_vm7 = vweird.f32 %v368_v25 }
 0x260   :  { %v460_v26 = vpop.f32.mrf.mxu3  ;;  %v382_v45 = vor.u32 1.1754944e-38, %v381_v37  ;;  %vm380_vm9 = vcmp.eq.f32.partialorder %v379_v39, 8.507059e+37 }
 0x261   :  { %v463_v27 = vperm.slane %v460_v26, 0 }
 0x263   :  { %v946_v3 = vsub.f32 %v255_v8, %v463_v27  ;;  %v948_v4 = vsub.f32 %v254_v11, %v463_v27  ;;  %v952_v29 = vsub.f32 %v253_v13, %v463_v27  ;;  %v959_v34 = vsub.f32 %v252_v15, %v463_v27  ;;  %v596_v8 = vpop.f32.mrf.mxu1  ;;  %v519_v11 = vpop.permute.xlu2 %518 }
 0x264   :  { %v700_v5 = vpop.eup %699  ;;  %v347_v44 = vpop.f32.mrf.mxu2 }
 0x265   :  { %v471_v28 = vmul.f32 %v946_v3, %v946_v3  ;;  %v371_v30 = vmul.f32 %v700_v5, %v368_v25  ;;  %v470_v33 = vmul.f32 %v948_v4, %v948_v4  ;;  %v469_v36 = vmul.f32 %v952_v29, %v952_v29 }
 0x266   :  { %vm376_vm6 = vweird.f32 %v700_v5  ;;  %v468_v41 = vmul.f32 %v959_v34, %v959_v34 }
 0x267   :  { %484 = vmatpush.msrb.mxu2 %v471_v28  ;;  %v372_v35 = vsub.f32 1.0, %v371_v30  ;;  %vm377_vm8 = vmor %vm375_vm7, %vm376_vm6  ;;  %v552_v30 = vpop.permute.xlu1 %551 }
 0x269   :  { %485 = vmatpush.msrb.mxu2 %v470_v33  ;;  %v373_v38 = vmul.f32 %v700_v5, %v372_v35 }
 0x26b   :  { %486 = vmatpush.msrb.mxu2 %v469_v36  ;;  %v374_v43 = vadd.f32 %v700_v5, %v373_v38  ;;  %v599_v12 = vpop.f32.mrf.mxu1 }
 0x26d   :  { %487 = vmatpush.msrb.mxu2 %v468_v41  ;;  %v378_v46 = vsel %vm377_vm8, %v700_v5, %v374_v43 }
 0x26e   :  { %658 = vmatmul.msk.f32.vlgmr.msrb.gmra.mxu2 %vm60_vm0, %v439_v17  ;;  %v383_v49 = vsel %vm380_vm9, %v382_v45, %v378_v46  ;;  %v524_v17 = vpop.permute.xlu0 %523 }
 0x26f   :  { %v384_v50 = vmul.f32 %v383_v49, %v347_v44 }
 0x271   :  { %v385_v51 = vadd.f32 0.0001, %v384_v50 }
 0x273   :  { %701 = vrsqrt.f32 %v385_v51  ;;  %vm392_vm11 = vweird.f32 %v385_v51  ;;  %v602_v21 = vpop.f32.mrf.mxu1 }
 0x276   :  { %v547_v28 = vpop.permute.xlu0 %546 }
 0x279   :  { %v702_v53 = vpop.eup %701 }
 0x27a   :  { %v387_v54 = vmul.f32 %v702_v53, %v385_v51  ;;  %vm393_vm10 = vweird.f32 %v702_v53 }
 0x27b   :  { %vm394_vm12 = vmor %vm392_vm11, %vm393_vm10  ;;  %v605_v38 = vpop.f32.mrf.mxu1 }
 0x27c   :  { %v388_v56 = vmul.f32 %v702_v53, %v387_v54 }
 0x27e   :  { %v389_v57 = vmul.f32 0.5, %v388_v56 }
 0x280   :  { %v390_v58 = vsub.f32 1.5, %v389_v57 }
 0x282   :  { %v391_v60 = vmul.f32 %v702_v53, %v390_v58 }
 0x284   :  { %v395_v61 = vsel %vm394_vm12, %v702_v53, %v391_v60 }
 0x285   :  { %v396_v62 = vperm.slane %v395_v61, 0 }
 0x287   :  { %v397_v63 = vmul.f32 %v928_v20, %v396_v62  ;;  %v542_v20 = vpop.permute.xlu2 %541 }
 0x289   :  { %425 = vmatpush.msrb.mxu0 %v397_v63 }
 0x28a   :  { %654 = vmatmul.msk.f32.vlgmr.msrb.gmra.mxu0 %vm145_vm4, %v398_v0 }
 0x28f   :  { %v557_v37 = vpop.permute.xlu2 %556 }
 0x292   :  { %655 = vmatmul.msk.f32.gmra.mxu0 %vm145_vm4, %v399_v1 }
 0x29a   :  { %656 = vmatmul.msk.f32.gmra.mxu0 %vm145_vm4, %v400_v6 }
 0x2f1   :  { %v489_v9 = vpop.f32.mrf.mxu2 }
 0x2f2   :  { %v490_v10 = vadd.f32 1e-05, %v489_v9 }
 0x2f4   :  { %703 = vrsqrt.f32 %v490_v10  ;;  %vm498_vm13 = vweird.f32 %v490_v10 }
 0x2fa   :  { %v704_v13 = vpop.eup %703 }
 0x2fb   :  { %v493_v14 = vmul.f32 %v704_v13, %v490_v10  ;;  %vm499_vm14 = vweird.f32 %v704_v13 }
 0x2fc   :  { %vm500_vm15 = vmor %vm498_vm13, %vm499_vm14 }
 0x2fd   :  { %v494_v15 = vmul.f32 %v704_v13, %v493_v14 }
 0x2ff   :  { %v495_v16 = vmul.f32 0.5, %v494_v15 }
 0x301   :  { %v496_v19 = vsub.f32 1.5, %v495_v16 }
 0x303   :  { %v497_v22 = vmul.f32 %v704_v13, %v496_v19 }
 0x305   :  { %v501_v23 = vsel %vm500_vm15, %v704_v13, %v497_v22 }
 0x306   :  { %v502_v24 = vperm.slane %v501_v23, 0 }
 0x307   :  { %v427_v27 = vpop.f32.mrf.mxu0 }
 0x308   :  { %v503_v25 = vmul.f32 %v502_v24, %v959_v34  ;;  %v504_v26 = vmul.f32 %v502_v24, %v952_v29  ;;  %v505_v2 = vmul.f32 %v502_v24, %v948_v4  ;;  %v506_v5 = vmul.f32 %v502_v24, %v946_v3 }
 0x309   :  { %v436_v3 = vmul.f32 %v427_v27, %v880_v47 }
 0x30a   :  { %v531_v31 = vmul.f32 %v514_v7, %v503_v25  ;;  %v532_v33 = vmul.f32 %v519_v11, %v504_v26  ;;  %v533_v35 = vmul.f32 %v524_v17, %v505_v2  ;;  %v534_v36 = vmul.f32 %v529_v18, %v506_v5 }
 0x30c   :  { %v560_v39 = vadd.f32 %v547_v28, %v532_v33  ;;  %v559_v41 = vadd.f32 %v542_v20, %v531_v31  ;;  %v561_v42 = vadd.f32 %v552_v30, %v533_v35  ;;  %v562_v43 = vadd.f32 %v557_v37, %v534_v36 }
 0x30e   :  { %v609_v34 = vadd.f32 %v599_v12, %v560_v39  ;;  %v608_v44 = vadd.f32 %v596_v8, %v559_v41  ;;  %v610_v29 = vadd.f32 %v602_v21, %v561_v42  ;;  %v611_v45 = vadd.f32 %v605_v38, %v562_v43 }
 0x30f   :  { %v430_v48 = vpop.f32.mrf.mxu0 }
 0x310   :  { %v674_v4 = vpack.c.bf16 %v609_v34, %v608_v44  ;;  %v679_v46 = vpack.c.bf16 %v611_v45, %v610_v29  ;;  %v437_v49 = vmul.f32 %v430_v48, %v865_v32 }
 0x312   :  { %675 = vst [vmem:[%s1029_s14] sm:$0xff] %v674_v4   ;;  %v684_v50 = vpack.c.bf16 %v437_v49, %v436_v3 }
 0x313   :  { %687 = vst [vmem:[%s1029_s14 + $0x8] sm:$0xff] %v679_v46  }
 0x314   :  { %685 = vst [vmem:[%s1030_s15] sm:$0xff] %v684_v50  }
 0x317   :  { %v433_v51 = vpop.f32.mrf.mxu0 }
 0x318   :  { %v438_v52 = vmul.f32 %v433_v51, %v873_v40 }
 0x31a   :  { %v622_v53 = vpack.c.bf16 %v438_v52, %v438_v52 }
 0x31c   :  { %625 = vst [vmem:[%s1030_s15 + $0x8] sm:$0xf] %v622_v53 }

</bundles_post_ra>
